<compile_context>
chip_gen: v7x
topology: tpu7x:2x2x1
jax: 0.10.0
libtpu: 0.0.40
codegen_flags: <defaults>
</compile_context>

<pallas_src>
import functools

import jax
import jax.numpy as jnp
from jax import lax
from jax.experimental import pallas as pl
from jax.experimental.pallas import tpu as pltpu

SIGMA = 0.1
LANES = 1024          # lane-dense output: large multiple of 128 -> unmasked vst
MAX_BLOCK_ROWS = 512  # (512, 1024) f32 = 2 MiB per block


def _round_up(x, m):
    return ((x + m - 1) // m) * m


def _mix32(x):
    """lowbias32 integer hash (uint32 -> uint32), plain VPU ops."""
    x = x ^ (x >> jnp.uint32(16))
    x = x * jnp.uint32(0x7FEB352D)
    x = x ^ (x >> jnp.uint32(15))
    x = x * jnp.uint32(0x846CA68B)
    x = x ^ (x >> jnp.uint32(16))
    return x


def _bits_to_uniform(bits):
    """uint32 -> float32 uniform in [0, 1) using the top 24 bits."""
    return (bits >> jnp.uint32(8)).astype(jnp.int32).astype(jnp.float32) * jnp.float32(
        1.0 / (1 << 24)
    )


def gaussian_noise_kernel(seed_ref, x_ref, o_ref, *, sigma, block_rows, lanes):
    # seed_ref: SMEM (1,) int32 ; x_ref/o_ref: VMEM (block_rows, lanes) tiles.
    half = block_rows // 2

    # --- per-element counters (unique per tile element across the whole grid) ---
    base = pl.program_id(0).astype(jnp.uint32) * jnp.uint32(block_rows * lanes)
    row = lax.broadcasted_iota(jnp.int32, (half, lanes), 0)
    col = lax.broadcasted_iota(jnp.int32, (half, lanes), 1)
    ctr = base + (row * lanes + col).astype(jnp.uint32)

    seed = seed_ref[0].astype(jnp.uint32)
    k1 = seed * jnp.uint32(0x9E3779B1) + jnp.uint32(0x7F4A7C15)
    k2 = seed * jnp.uint32(0x85EBCA77) + jnp.uint32(0xC2B2AE3D)

    # Two decorrelated 32-bit streams per (u1, u2) pair.
    b1 = _mix32(ctr ^ k1)
    b2 = _mix32(b1 ^ k2)

    u1 = _bits_to_uniform(b1)          # in [0, 1)
    u2 = _bits_to_uniform(b2)          # in [0, 1)

    # Box-Muller; 1 - u1 in (0, 1] keeps the log safe; sigma folded into radius.
    r = jnp.float32(sigma) * jnp.sqrt(jnp.float32(-2.0) * jnp.log(jnp.float32(1.0) - u1))
    theta = jnp.float32(2.0 * jnp.pi) * u2
    n1 = r * jnp.cos(theta)            # first half of the tile
    n2 = r * jnp.sin(theta)            # second half of the tile (reuse the pair)

    x_lo = x_ref[:half, :].astype(jnp.float32)
    x_hi = x_ref[half:, :].astype(jnp.float32)
    o_ref[:half, :] = (x_lo * (jnp.float32(1.0) + n1)).astype(o_ref.dtype)
    o_ref[half:, :] = (x_hi * (jnp.float32(1.0) + n2)).astype(o_ref.dtype)


def gaussian_noise(x, seed, *, sigma=SIGMA, training=True):
    """Forward pass of GaussianNoise. x: any-shape float array (NCHW expected)."""
    if (not training) or sigma == 0:
        return x

    orig_shape = x.shape
    orig_dtype = x.dtype
    n = x.size

    # Flatten to a lane-dense 2-D slab (rows, LANES); pad so the grid tiles evenly.
    rows = pl.cdiv(n, LANES)
    rows = _round_up(rows, 8)
    block_rows = min(MAX_BLOCK_ROWS, rows)
    rows = _round_up(rows, block_rows)
    padded = rows * LANES

    flat = x.reshape(-1)
    if padded != n:
        flat = jnp.pad(flat, (0, padded - n))
    x2 = flat.reshape(rows, LANES)

    seed_arr = jnp.asarray([seed], dtype=jnp.int32)
    grid = (rows // block_rows,)

    kernel = functools.partial(
        gaussian_noise_kernel, sigma=float(sigma), block_rows=block_rows, lanes=LANES
    )

    out2 = pl.pallas_call(
        kernel,
        out_shape=jax.ShapeDtypeStruct((rows, LANES), orig_dtype),
        grid=grid,
        in_specs=[
            pl.BlockSpec(memory_space=pltpu.MemorySpace.SMEM),       # seed scalar
            pl.BlockSpec((block_rows, LANES), lambda i: (i, 0)),     # x tile
        ],
        out_specs=pl.BlockSpec((block_rows, LANES), lambda i: (i, 0)),
        input_output_aliases={1: 0},                                 # in-place style
        compiler_params=pltpu.CompilerParams(
            dimension_semantics=("parallel",),
        ),
        cost_estimate=pl.CostEstimate(
            flops=16 * padded,
            transcendentals=2 * padded,
            bytes_accessed=2 * padded * jnp.dtype(orig_dtype).itemsize,
        ),
    )(seed_arr, x2)

    return out2.reshape(-1)[:n].reshape(orig_shape)


if __name__ == "__main__":
    key = jax.random.PRNGKey(0)
    x = jax.random.normal(key, (2, 4, 16, 16), dtype=jnp.float32)

    # training mode: relative Gaussian noise is applied
    y = gaussian_noise(x, seed=0, sigma=SIGMA, training=True)
    jax.block_until_ready(y)
    assert y.shape == x.shape and y.dtype == x.dtype

    # eval mode (or sigma == 0): identity, matching the PyTorch module
    y_eval = gaussian_noise(x, seed=0, sigma=SIGMA, training=False)
    assert jnp.allclose(y_eval, x)

    # sanity: noise is relative -> mean relative perturbation ~ sigma * E|N(0,1)| ~ 0.08
    rel = jnp.abs(y - x) / (jnp.abs(x) + 1e-12)
    m = float(jnp.mean(rel))
    assert 0.0 < m < 0.5, m

    # determinism: same seed -> same noise
    y2 = gaussian_noise(x, seed=0, sigma=SIGMA, training=True)
    assert jnp.allclose(y, y2)

    print("KERNEL_OK")
</pallas_src>

<mosaic_0001>
module attributes {stable_mosaic.version = 11 : i64} {
  func.func @gaussian_noise_kernel(%arg0: i32, %arg1: memref<1xi32, #tpu.memory_space<smem>>, %arg2: memref<8x1024xf32, #tpu.memory_space<vmem>>, %arg3: memref<8x1024xf32, #tpu.memory_space<vmem>>) attributes {dimension_semantics = [#tpu.dimension_semantics<parallel>], iteration_bounds = array<i64: 1>, scalar_prefetch = 0 : i64, scratch_operands = 0 : i64, tpu.core_type = #tpu.core_type<tc>, window_params = [{transform_indices = @transform_0, window_bounds = array<i64: 1>}, {transform_indices = @transform_1, window_bounds = array<i64: 8, 1024>}, {transform_indices = @transform_2, window_bounds = array<i64: 8, 1024>}]} {
    %c8192_i32 = arith.constant 8192 : i32
    %0 = arith.muli %arg0, %c8192_i32 : i32
    %1 = tpu.iota {dimensions = array<i32: 0>} : vector<4x1024xi32>
    %2 = tpu.iota {dimensions = array<i32: 1>} : vector<4x1024xi32>
    %c1024_i32 = arith.constant 1024 : i32
    %3 = vector.broadcast %c1024_i32 : i32 to vector<4x1024xi32>
    %4 = arith.muli %1, %3 : vector<4x1024xi32>
    %5 = arith.addi %4, %2 : vector<4x1024xi32>
    %6 = vector.broadcast %0 : i32 to vector<4x1024xi32>
    %7 = arith.addi %6, %5 : vector<4x1024xi32>
    %c0 = arith.constant 0 : index
    %8 = memref.load %arg1[%c0] : memref<1xi32, #tpu.memory_space<smem>>
    %c-1640531535_i32 = arith.constant -1640531535 : i32
    %9 = arith.muli %8, %c-1640531535_i32 : i32
    %c2135587861_i32 = arith.constant 2135587861 : i32
    %10 = arith.addi %9, %c2135587861_i32 : i32
    %c-2048144777_i32 = arith.constant -2048144777 : i32
    %11 = arith.muli %8, %c-2048144777_i32 : i32
    %c-1028477379_i32 = arith.constant -1028477379 : i32
    %12 = arith.addi %11, %c-1028477379_i32 : i32
    %13 = vector.broadcast %10 : i32 to vector<4x1024xi32>
    %14 = arith.xori %7, %13 : vector<4x1024xi32>
    %c16_i32 = arith.constant 16 : i32
    %15 = vector.broadcast %c16_i32 : i32 to vector<4x1024xi32>
    %16 = arith.shrui %14, %15 : vector<4x1024xi32>
    %17 = arith.xori %14, %16 : vector<4x1024xi32>
    %c2146121005_i32 = arith.constant 2146121005 : i32
    %18 = vector.broadcast %c2146121005_i32 : i32 to vector<4x1024xi32>
    %19 = arith.muli %17, %18 : vector<4x1024xi32>
    %c15_i32 = arith.constant 15 : i32
    %20 = vector.broadcast %c15_i32 : i32 to vector<4x1024xi32>
    %21 = arith.shrui %19, %20 : vector<4x1024xi32>
    %22 = arith.xori %19, %21 : vector<4x1024xi32>
    %c-2073254261_i32 = arith.constant -2073254261 : i32
    %23 = vector.broadcast %c-2073254261_i32 : i32 to vector<4x1024xi32>
    %24 = arith.muli %22, %23 : vector<4x1024xi32>
    %c16_i32_0 = arith.constant 16 : i32
    %25 = vector.broadcast %c16_i32_0 : i32 to vector<4x1024xi32>
    %26 = arith.shrui %24, %25 : vector<4x1024xi32>
    %27 = arith.xori %24, %26 : vector<4x1024xi32>
    %28 = vector.broadcast %12 : i32 to vector<4x1024xi32>
    %29 = arith.xori %27, %28 : vector<4x1024xi32>
    %c16_i32_1 = arith.constant 16 : i32
    %30 = vector.broadcast %c16_i32_1 : i32 to vector<4x1024xi32>
    %31 = arith.shrui %29, %30 : vector<4x1024xi32>
    %32 = arith.xori %29, %31 : vector<4x1024xi32>
    %c2146121005_i32_2 = arith.constant 2146121005 : i32
    %33 = vector.broadcast %c2146121005_i32_2 : i32 to vector<4x1024xi32>
    %34 = arith.muli %32, %33 : vector<4x1024xi32>
    %c15_i32_3 = arith.constant 15 : i32
    %35 = vector.broadcast %c15_i32_3 : i32 to vector<4x1024xi32>
    %36 = arith.shrui %34, %35 : vector<4x1024xi32>
    %37 = arith.xori %34, %36 : vector<4x1024xi32>
    %c-2073254261_i32_4 = arith.constant -2073254261 : i32
    %38 = vector.broadcast %c-2073254261_i32_4 : i32 to vector<4x1024xi32>
    %39 = arith.muli %37, %38 : vector<4x1024xi32>
    %c16_i32_5 = arith.constant 16 : i32
    %40 = vector.broadcast %c16_i32_5 : i32 to vector<4x1024xi32>
    %41 = arith.shrui %39, %40 : vector<4x1024xi32>
    %42 = arith.xori %39, %41 : vector<4x1024xi32>
    %c8_i32 = arith.constant 8 : i32
    %43 = vector.broadcast %c8_i32 : i32 to vector<4x1024xi32>
    %44 = arith.shrui %27, %43 : vector<4x1024xi32>
    %45 = arith.sitofp %44 : vector<4x1024xi32> to vector<4x1024xf32>
    %cst = arith.constant 5.96046448E-8 : f32
    %46 = vector.broadcast %cst : f32 to vector<4x1024xf32>
    %47 = arith.mulf %45, %46 : vector<4x1024xf32>
    %c8_i32_6 = arith.constant 8 : i32
    %48 = vector.broadcast %c8_i32_6 : i32 to vector<4x1024xi32>
    %49 = arith.shrui %42, %48 : vector<4x1024xi32>
    %50 = arith.sitofp %49 : vector<4x1024xi32> to vector<4x1024xf32>
    %cst_7 = arith.constant 5.96046448E-8 : f32
    %51 = vector.broadcast %cst_7 : f32 to vector<4x1024xf32>
    %52 = arith.mulf %50, %51 : vector<4x1024xf32>
    %cst_8 = arith.constant 1.000000e+00 : f32
    %53 = vector.broadcast %cst_8 : f32 to vector<4x1024xf32>
    %54 = arith.subf %53, %47 : vector<4x1024xf32>
    %55 = math.log %54 : vector<4x1024xf32>
    %cst_9 = arith.constant -2.000000e+00 : f32
    %56 = vector.broadcast %cst_9 : f32 to vector<4x1024xf32>
    %57 = arith.mulf %56, %55 : vector<4x1024xf32>
    %58 = math.sqrt %57 : vector<4x1024xf32>
    %cst_10 = arith.constant 1.000000e-01 : f32
    %59 = vector.broadcast %cst_10 : f32 to vector<4x1024xf32>
    %60 = arith.mulf %59, %58 : vector<4x1024xf32>
    %cst_11 = arith.constant 6.28318548 : f32
    %61 = vector.broadcast %cst_11 : f32 to vector<4x1024xf32>
    %62 = arith.mulf %61, %52 : vector<4x1024xf32>
    %63 = math.cos %62 : vector<4x1024xf32>
    %64 = arith.mulf %60, %63 : vector<4x1024xf32>
    %65 = math.sin %62 : vector<4x1024xf32>
    %66 = arith.mulf %60, %65 : vector<4x1024xf32>
    %c0_12 = arith.constant 0 : index
    %c0_13 = arith.constant 0 : index
    %67 = vector.load %arg2[%c0_12, %c0_13] : memref<8x1024xf32, #tpu.memory_space<vmem>>, vector<4x1024xf32>
    %c4 = arith.constant 4 : index
    %c0_14 = arith.constant 0 : index
    %68 = vector.load %arg2[%c4, %c0_14] : memref<8x1024xf32, #tpu.memory_space<vmem>>, vector<4x1024xf32>
    %cst_15 = arith.constant 1.000000e+00 : f32
    %69 = vector.broadcast %cst_15 : f32 to vector<4x1024xf32>
    %70 = arith.addf %69, %64 : vector<4x1024xf32>
    %71 = arith.mulf %67, %70 : vector<4x1024xf32>
    %c0_16 = arith.constant 0 : index
    %c0_17 = arith.constant 0 : index
    %72 = vector.load %arg3[%c0_16, %c0_17] : memref<8x1024xf32, #tpu.memory_space<vmem>>, vector<4x1024xf32>
    tpu.vector_store %arg3[%c0_16, %c0_17], %71 {strides = array<i32>} : memref<8x1024xf32, #tpu.memory_space<vmem>>, vector<4x1024xf32>,
    %cst_18 = arith.constant 1.000000e+00 : f32
    %73 = vector.broadcast %cst_18 : f32 to vector<4x1024xf32>
    %74 = arith.addf %73, %66 : vector<4x1024xf32>
    %75 = arith.mulf %68, %74 : vector<4x1024xf32>
    %c4_19 = arith.constant 4 : index
    %c0_20 = arith.constant 0 : index
    %76 = vector.load %arg3[%c4_19, %c0_20] : memref<8x1024xf32, #tpu.memory_space<vmem>>, vector<4x1024xf32>
    tpu.vector_store %arg3[%c4_19, %c0_20], %75 {strides = array<i32>} : memref<8x1024xf32, #tpu.memory_space<vmem>>, vector<4x1024xf32>,
    return
  }
  func.func @transform_0(%arg0: i32) -> i32 {
    %c0_i32 = arith.constant 0 : i32
    %c0_i32_0 = arith.constant 0 : i32
    return %c0_i32 : i32
  }
  func.func @transform_1(%arg0: i32) -> (i32, i32) {
    %c0_i32 = arith.constant 0 : i32
    %c0_i32_0 = arith.constant 0 : i32
    return %arg0, %c0_i32 : i32, i32
  }
  func.func @transform_2(%arg0: i32) -> (i32, i32) {
    %c0_i32 = arith.constant 0 : i32
    %c0_i32_0 = arith.constant 0 : i32
    return %arg0, %c0_i32 : i32, i32
  }
}

</mosaic_0001>

<bundles_post_ra>
// kernel: tpu_custom_call.1
= control target key start
LH: loop header
LB: loop body
LE: loop exit
PB: predicated region body
PF: predicated region fallthrough
CT: control target
= control target key end

     0   :  { %8 = vsyncpa [#allocation4], 0  ;;  %s3485_s0 = inlined_call_operand.<no memory space> [shape: s32[1], index: 0, kind: input, shape index: {}]   ;;  %s3486_s1 = inlined_call_operand.hbm [shape: f32[8,1024], index: 1, kind: input, shape index: {}, may-alias: {1,2}]   ;;  %s3487_s2 = inlined_call_operand.hbm [shape: f32[8,1024], index: 2, kind: output, shape index: {}, may-alias: {1,2}]  }
   0x1   :  { %9 = vsyncpa [#allocation5], 0  ;;  %s2349_s9 = smov [#allocation3]   ;;  %s2301_s13 = scalar_lea.hbm %s3486_s1, 1024 }
   0x2   :  { %s18_s10 = sshll.u32 %s2349_s9, 4  ;;  %p2302_p0 = scmp.ne.s32.totalorder %s3486_s1, %s2301_s13  ;;  %s19_s10 = int_to_ptr.vmem [resolvable:$true] %s18_s10 }
   0x3   :  { %p2305_p1 = scmp.lt.u32.totalorder %s2301_s13, %s3486_s1 }
   0x5   :  { %p2307_p2 = pnand %p2305_p1, %p2302_p0 }
   0x7   :  { %2310 = shalt.err (!%p2307_p2)
}
   0x8   :  { %s2311_s18 = scalar_lea.vmem %s19_s10, 1024  ;;  %p2316_p4 = scmp.lt.s32.totalorder %s19_s10, %s19_s10 }
   0x9   :  { %p2312_p3 = scmp.ne.s32.totalorder %s19_s10, %s2311_s18  ;;  %p2317_p5 = scmp.lt.s32.totalorder %s2311_s18, %s2311_s18 }
   0xb   :  { %p2318_p6 = por %p2317_p5, %p2316_p4 }
   0xd   :  { %p2319_p7 = pnand %p2318_p6, %p2312_p3 }
   0xf   :  { %2322 = shalt.err (!%p2319_p7)
}
  0x10   :  { %21 = dma.hbm_to_vmem [thread:$0]  %s3486_s1, 1024, %s19_s10, [#allocation4]  }
  0x11   :  { %2345 = dma.done.wait [#allocation4], 1024  }
  0x12   :  { %2346 = vsyncadd [#allocation4], 4294966272  ;;  %v26_v0 = vlaneseq  ;;  %s56_s23 = smul.u32 2654435761, %s3485_s0 }
  0x13   :  { %s58_s26 = smul.u32 2246822519, %s3485_s0  ;;  %s2356_s0 = smov [#allocation6]  }
  0x14   :  { %v27_v1 = vshrl.u32 %v26_v0, 7  ;;  %v29_v2 = vand.u32 127, %v26_v0  ;;  %s57_s24 = sadd.s32 2135587861, %s56_s23  ;;  %s2124_s28 = sshll.u32 %s2356_s0, 4  ;;  %s2125_s28 = int_to_ptr.vmem [resolvable:$true] %s2124_s28 }
  0x15   :  { %v60_v11 = vstv %s57_s24  ;;  %s59_s27 = sadd.s32 3266489917, %s58_s26  ;;  %s2323_s29 = scalar_lea.vmem %s2125_s28, 1024 }
  0x16   :  { %v30_v3 = vadd.s32 128, %v29_v2  ;;  %v31_v4 = vadd.s32 256, %v29_v2  ;;  %v32_v5 = vadd.s32 384, %v29_v2  ;;  %v33_v6 = vadd.s32 512, %v29_v2  ;;  %p2324_p8 = scmp.ne.s32.totalorder %s2125_s28, %s2323_s29  ;;  %p2328_p9 = scmp.lt.s32.totalorder %s2125_s28, %s2125_s28 }
  0x17   :  { %v34_v7 = vadd.s32 640, %v29_v2  ;;  %v35_v8 = vadd.s32 768, %v29_v2  ;;  %v36_v9 = vadd.s32 896, %v29_v2  ;;  %v37_v10 = vmul.u32 1024, %v27_v1  ;;  %p2329_p10 = scmp.lt.s32.totalorder %s2323_s29, %s2323_s29 }
  0x19   :  { %v38_v12 = vadd.s32 %v37_v10, %v29_v2  ;;  %v39_v13 = vadd.s32 %v37_v10, %v30_v3  ;;  %v40_v14 = vadd.s32 %v37_v10, %v31_v4  ;;  %v41_v15 = vadd.s32 %v37_v10, %v32_v5  ;;  %p2330_p11 = por %p2329_p10, %p2328_p9 }
  0x1a   :  { %v42_v16 = vadd.s32 %v37_v10, %v33_v6  ;;  %v43_v17 = vadd.s32 %v37_v10, %v34_v7  ;;  %v44_v18 = vadd.s32 %v37_v10, %v35_v8  ;;  %v45_v19 = vadd.s32 %v37_v10, %v36_v9 }
  0x1b   :  { %v61_v20 = vxor.u32 %v60_v11, %v38_v12  ;;  %v62_v21 = vxor.u32 %v60_v11, %v39_v13  ;;  %v63_v22 = vxor.u32 %v60_v11, %v40_v14  ;;  %v64_v23 = vxor.u32 %v60_v11, %v41_v15  ;;  %p2331_p12 = pnand %p2330_p11, %p2324_p8 }
  0x1c   :  { %v65_v24 = vxor.u32 %v60_v11, %v42_v16  ;;  %v66_v25 = vxor.u32 %v60_v11, %v43_v17  ;;  %v67_v26 = vxor.u32 %v60_v11, %v44_v18  ;;  %v68_v27 = vxor.u32 %v60_v11, %v45_v19 }
  0x1d   :  { %v69_v28 = vshrl.u32 %v61_v20, 16  ;;  %v70_v29 = vshrl.u32 %v62_v21, 16  ;;  %v71_v30 = vshrl.u32 %v63_v22, 16  ;;  %v72_v31 = vshrl.u32 %v64_v23, 16 }
  0x1e   :  { %v73_v32 = vshrl.u32 %v65_v24, 16  ;;  %v74_v33 = vshrl.u32 %v66_v25, 16  ;;  %v75_v34 = vshrl.u32 %v67_v26, 16  ;;  %v76_v35 = vshrl.u32 %v68_v27, 16 }
  0x1f   :  { %v77_v36 = vxor.u32 %v69_v28, %v61_v20  ;;  %v78_v37 = vxor.u32 %v70_v29, %v62_v21  ;;  %v79_v38 = vxor.u32 %v71_v30, %v63_v22  ;;  %v80_v39 = vxor.u32 %v72_v31, %v64_v23 }
  0x20   :  { %v81_v40 = vxor.u32 %v73_v32, %v65_v24  ;;  %v82_v41 = vxor.u32 %v74_v33, %v66_v25  ;;  %v83_v42 = vxor.u32 %v75_v34, %v67_v26  ;;  %v84_v43 = vxor.u32 %v76_v35, %v68_v27 }
  0x21   :  { %v85_v44 = vmul.u32 2146121005, %v77_v36  ;;  %v86_v45 = vmul.u32 2146121005, %v78_v37  ;;  %v133_v12 = vstv %s59_s27 }
  0x22   :  { %v87_v46 = vmul.u32 2146121005, %v79_v38  ;;  %v88_v47 = vmul.u32 2146121005, %v80_v39 }
  0x23   :  { %v89_v48 = vmul.u32 2146121005, %v81_v40  ;;  %v90_v49 = vmul.u32 2146121005, %v82_v41  ;;  %v93_v50 = vshrl.u32 %v85_v44, 15  ;;  %v94_v51 = vshrl.u32 %v86_v45, 15 }
  0x24   :  { %v91_v52 = vmul.u32 2146121005, %v83_v42  ;;  %v92_v53 = vmul.u32 2146121005, %v84_v43  ;;  %v95_v54 = vshrl.u32 %v87_v46, 15  ;;  %v96_v55 = vshrl.u32 %v88_v47, 15 }
  0x25   :  { %v97_v56 = vshrl.u32 %v89_v48, 15  ;;  %v98_v57 = vshrl.u32 %v90_v49, 15  ;;  %v101_v58 = vxor.u32 %v93_v50, %v85_v44  ;;  %v102_v59 = vxor.u32 %v94_v51, %v86_v45 }
  0x26   :  { %v99_v60 = vshrl.u32 %v91_v52, 15  ;;  %v100_v61 = vshrl.u32 %v92_v53, 15  ;;  %v103_v62 = vxor.u32 %v95_v54, %v87_v46  ;;  %v104_v63 = vxor.u32 %v96_v55, %v88_v47 }
  0x27   :  { %v105_v0 = vxor.u32 %v97_v56, %v89_v48  ;;  %v106_v1 = vxor.u32 %v98_v57, %v90_v49  ;;  %v109_v2 = vmul.u32 2221713035, %v101_v58  ;;  %v110_v3 = vmul.u32 2221713035, %v102_v59 }
  0x28   :  { %v107_v4 = vxor.u32 %v99_v60, %v91_v52  ;;  %v108_v5 = vxor.u32 %v100_v61, %v92_v53  ;;  %v111_v6 = vmul.u32 2221713035, %v103_v62  ;;  %v112_v7 = vmul.u32 2221713035, %v104_v63 }
  0x29   :  { %v117_v8 = vshrl.u32 %v109_v2, 16  ;;  %v118_v9 = vshrl.u32 %v110_v3, 16  ;;  %v113_v10 = vmul.u32 2221713035, %v105_v0  ;;  %v114_v13 = vmul.u32 2221713035, %v106_v1 }
  0x2a   :  { %v119_v11 = vshrl.u32 %v111_v6, 16  ;;  %v115_v14 = vmul.u32 2221713035, %v107_v4  ;;  %v116_v17 = vmul.u32 2221713035, %v108_v5  ;;  %v120_v19 = vshrl.u32 %v112_v7, 16 }
  0x2b   :  { %v2390_v15 = vxor.u32 %v117_v8, %v109_v2  ;;  %v2392_v16 = vxor.u32 %v118_v9, %v110_v3  ;;  %v121_v22 = vshrl.u32 %v113_v10, 16  ;;  %v122_v23 = vshrl.u32 %v114_v13, 16 }
  0x2c   :  { %v2394_v18 = vxor.u32 %v119_v11, %v111_v6  ;;  %v123_v24 = vshrl.u32 %v115_v14, 16  ;;  %v124_v27 = vshrl.u32 %v116_v17, 16  ;;  %v2399_v29 = vxor.u32 %v120_v19, %v112_v7 }
  0x2d   :  { %v134_v20 = vxor.u32 %v133_v12, %v2390_v15  ;;  %v135_v21 = vxor.u32 %v133_v12, %v2392_v16  ;;  %v2401_v32 = vxor.u32 %v121_v22, %v113_v10  ;;  %v2403_v33 = vxor.u32 %v122_v23, %v114_v13 }
  0x2e   :  { %v136_v28 = vxor.u32 %v133_v12, %v2394_v18  ;;  %v2405_v34 = vxor.u32 %v123_v24, %v115_v14  ;;  %v2407_v36 = vxor.u32 %v124_v27, %v116_v17  ;;  %v137_v39 = vxor.u32 %v133_v12, %v2399_v29 }
  0x2f   :  { %v142_v25 = vshrl.u32 %v134_v20, 16  ;;  %v143_v26 = vshrl.u32 %v135_v21, 16  ;;  %v138_v41 = vxor.u32 %v133_v12, %v2401_v32  ;;  %v139_v42 = vxor.u32 %v133_v12, %v2403_v33 }
  0x30   :  { %v144_v37 = vshrl.u32 %v136_v28, 16  ;;  %v140_v43 = vxor.u32 %v133_v12, %v2405_v34  ;;  %v141_v45 = vxor.u32 %v133_v12, %v2407_v36  ;;  %v145_v48 = vshrl.u32 %v137_v39, 16 }
  0x31   :  { %v150_v30 = vxor.u32 %v142_v25, %v134_v20  ;;  %v151_v31 = vxor.u32 %v143_v26, %v135_v21  ;;  %v146_v49 = vshrl.u32 %v138_v41, 16  ;;  %v147_v51 = vshrl.u32 %v139_v42, 16 }
  0x32   :  { %v152_v46 = vxor.u32 %v144_v37, %v136_v28  ;;  %v148_v52 = vshrl.u32 %v140_v43, 16  ;;  %v149_v53 = vshrl.u32 %v141_v45, 16  ;;  %v153_v56 = vxor.u32 %v145_v48, %v137_v39 }
  0x33   :  { %v158_v35 = vmul.u32 2146121005, %v150_v30  ;;  %v159_v38 = vmul.u32 2146121005, %v151_v31  ;;  %v154_v57 = vxor.u32 %v146_v49, %v138_v41  ;;  %v155_v59 = vxor.u32 %v147_v51, %v139_v42 }
  0x34   :  { %v160_v54 = vmul.u32 2146121005, %v152_v46  ;;  %v156_v60 = vxor.u32 %v148_v52, %v140_v43  ;;  %v157_v61 = vxor.u32 %v149_v53, %v141_v45  ;;  %v161_v0 = vmul.u32 2146121005, %v153_v56 }
  0x35   :  { %v166_v40 = vshrl.u32 %v158_v35, 15  ;;  %v167_v47 = vshrl.u32 %v159_v38, 15  ;;  %v162_v1 = vmul.u32 2146121005, %v154_v57  ;;  %v163_v3 = vmul.u32 2146121005, %v155_v59 }
  0x36   :  { %v168_v62 = vshrl.u32 %v160_v54, 15  ;;  %v164_v4 = vmul.u32 2146121005, %v156_v60  ;;  %v165_v5 = vmul.u32 2146121005, %v157_v61  ;;  %v169_v8 = vshrl.u32 %v161_v0, 15 }
  0x37   :  { %v174_v44 = vxor.u32 %v166_v40, %v158_v35  ;;  %v175_v55 = vxor.u32 %v167_v47, %v159_v38  ;;  %v170_v10 = vshrl.u32 %v162_v1, 15  ;;  %v171_v11 = vshrl.u32 %v163_v3, 15 }
  0x38   :  { %v176_v6 = vxor.u32 %v168_v62, %v160_v54  ;;  %v172_v12 = vshrl.u32 %v164_v4, 15  ;;  %v173_v13 = vshrl.u32 %v165_v5, 15  ;;  %v177_v20 = vxor.u32 %v169_v8, %v161_v0 }
  0x39   :  { %v182_v50 = vmul.u32 2221713035, %v174_v44  ;;  %v183_v63 = vmul.u32 2221713035, %v175_v55  ;;  %v206_v21 = vshrl.u32 %v2390_v15, 8  ;;  %v207_v22 = vshrl.u32 %v2392_v16, 8 }
  0x3a   :  { %v184_v14 = vmul.u32 2221713035, %v176_v6  ;;  %v178_v24 = vxor.u32 %v170_v10, %v162_v1  ;;  %v179_v25 = vxor.u32 %v171_v11, %v163_v3  ;;  %v180_v26 = vxor.u32 %v172_v12, %v164_v4 }
  0x3b   :  { %v190_v58 = vshrl.u32 %v182_v50, 16  ;;  %v191_v7 = vshrl.u32 %v183_v63, 16  ;;  %v181_v27 = vxor.u32 %v173_v13, %v165_v5  ;;  %v185_v31 = vmul.u32 2221713035, %v177_v20 }
  0x3c   :  { %v192_v28 = vshrl.u32 %v184_v14, 16  ;;  %v208_v35 = vshrl.u32 %v2394_v18, 8  ;;  %v214_v37 = vcvt.s32.f32 %v206_v21  ;;  %v209_v38 = vshrl.u32 %v2399_v29, 8 }
  0x3d   :  { %v198_v2 = vxor.u32 %v190_v58, %v182_v50  ;;  %v199_v17 = vxor.u32 %v191_v7, %v183_v63  ;;  %v215_v39 = vcvt.s32.f32 %v207_v22  ;;  %v186_v41 = vmul.u32 2221713035, %v178_v24 }
  0x3e   :  { %v187_v15 = vmul.u32 2221713035, %v179_v25  ;;  %v210_v16 = vshrl.u32 %v2401_v32, 8  ;;  %v188_v42 = vmul.u32 2221713035, %v180_v26  ;;  %v200_v44 = vxor.u32 %v192_v28, %v184_v14 }
  0x3f   :  { %v230_v9 = vshrl.u32 %v198_v2, 8  ;;  %v231_v30 = vshrl.u32 %v199_v17, 8  ;;  %v189_v43 = vmul.u32 2221713035, %v181_v27  ;;  %v193_v46 = vshrl.u32 %v185_v31, 16 }
  0x40   :  { %v216_v47 = vcvt.s32.f32 %v208_v35  ;;  %v222_v48 = vmul.f32 5.9604645e-08, %v214_v37  ;;  %v211_v18 = vshrl.u32 %v2403_v33, 8  ;;  %v212_v29 = vshrl.u32 %v2405_v34, 8 }
  0x41   :  { %v238_v19 = vcvt.s32.f32 %v230_v9  ;;  %v239_v45 = vcvt.s32.f32 %v231_v30  ;;  %v217_v50 = vcvt.s32.f32 %v209_v38  ;;  %v223_v51 = vmul.f32 5.9604645e-08, %v215_v39 }
  0x42   :  { %v194_v52 = vshrl.u32 %v186_v41, 16  ;;  %v195_v53 = vshrl.u32 %v187_v15, 16  ;;  %v218_v54 = vcvt.s32.f32 %v210_v16  ;;  %v196_v32 = vshrl.u32 %v188_v42, 16 }
  0x43   :  { %v246_v23 = vmul.f32 5.9604645e-08, %v238_v19  ;;  %v197_v56 = vshrl.u32 %v189_v43, 16  ;;  %v232_v57 = vshrl.u32 %v200_v44, 8  ;;  %v247_v58 = vmul.f32 5.9604645e-08, %v239_v45 }
  0x44   :  { %v201_v59 = vxor.u32 %v193_v46, %v185_v31  ;;  %v213_v60 = vshrl.u32 %v2407_v36, 8  ;;  %v224_v61 = vmul.f32 5.9604645e-08, %v216_v47  ;;  %v254_v62 = vsub.f32 1.0, %v222_v48 }
  0x45   :  { %v2418_v40 = vmul.f32 6.2831855, %v246_v23  ;;  %v219_v63 = vcvt.s32.f32 %v211_v18  ;;  %v220_v0 = vcvt.s32.f32 %v212_v29  ;;  %v225_v33 = vmul.f32 5.9604645e-08, %v217_v50 }
  0x46   :  { %v255_v1 = vsub.f32 1.0, %v223_v51  ;;  %v202_v34 = vxor.u32 %v194_v52, %v186_v41  ;;  %v203_v2 = vxor.u32 %v195_v53, %v187_v15  ;;  %v226_v3 = vmul.f32 5.9604645e-08, %v218_v54 }
  0x47   :  { %v361_v49 = vand.u32 2139095040, %v2418_v40  ;;  %v204_v5 = vxor.u32 %v196_v32, %v188_v42  ;;  %v205_v6 = vxor.u32 %v197_v56, %v189_v43  ;;  %v240_v7 = vcvt.s32.f32 %v232_v57 }
  0x48   :  { %v2425_v8 = vmul.f32 6.2831855, %v247_v58  ;;  %v221_v9 = vcvt.s32.f32 %v213_v60  ;;  %v233_v10 = vshrl.u32 %v201_v59, 8  ;;  %v256_v11 = vsub.f32 1.0, %v224_v61 }
  0x49   :  { %v362_v55 = vshrl.u32 %v361_v49, 23  ;;  %2237 = vlog2.f32 %v254_v62  ;;  %v227_v36 = vmul.f32 5.9604645e-08, %v219_v63  ;;  %v228_v12 = vmul.f32 5.9604645e-08, %v220_v0 }
  0x4a   :  { %v257_v13 = vsub.f32 1.0, %v225_v33  ;;  %2239 = vlog2.f32 %v255_v1  ;;  %v234_v14 = vshrl.u32 %v202_v34, 8  ;;  %v235_v17 = vshrl.u32 %v203_v2, 8 }
  0x4b   :  { %v2133_v4 = vadd.s32 4294967169, %v362_v55  ;;  %v258_v19 = vsub.f32 1.0, %v226_v3  ;;  %v236_v21 = vshrl.u32 %v204_v5, 8  ;;  %v237_v22 = vshrl.u32 %v205_v6, 8 }
  0x4c   :  { %v248_v23 = vmul.f32 5.9604645e-08, %v240_v7  ;;  %v464_v24 = vand.u32 2139095040, %v2425_v8  ;;  %v241_v25 = vcvt.s32.f32 %v233_v10  ;;  %2241 = vlog2.f32 %v256_v11 }
  0x4d   :  { %v368_v20 = vadd.s32 1, %v2133_v4  ;;  %v358_v26 = vand.u32 2147483647, %v2418_v40  ;;  %v3489_v27 = vand.u32 2147483647, %v2425_v8  ;;  %v229_v28 = vmul.f32 5.9604645e-08, %v221_v9 }
  0x4e   :  { %v259_v30 = vsub.f32 1.0, %v227_v36  ;;  %2243 = vlog2.f32 %v257_v13  ;;  %v242_v31 = vcvt.s32.f32 %v234_v14  ;;  %v260_v35 = vsub.f32 1.0, %v228_v12 }
  0x4f   :  { %2245 = vlog2.f32 %v258_v19  ;;  %vm369_vm0 = vcmp.gt.s32.totalorder %v368_v20, 0  ;;  %v243_v37 = vcvt.s32.f32 %v235_v17  ;;  %v244_v38 = vcvt.s32.f32 %v236_v21 }
  0x50   :  { %v2430_v39 = vmul.f32 6.2831855, %v248_v23  ;;  %v465_v41 = vshrl.u32 %v464_v24, 23  ;;  %v245_v15 = vcvt.s32.f32 %v237_v22  ;;  %v249_v16 = vmul.f32 5.9604645e-08, %v241_v25 }
  0x51   :  { %v365_v42 = vand.u32 8388607, %v358_v26  ;;  %v468_v43 = vand.u32 8388607, %v3489_v27  ;;  %v261_v44 = vsub.f32 1.0, %v229_v28  ;;  %2247 = vlog2.f32 %v259_v30 }
  0x52   :  { %v370_v45 = vsel %vm369_vm0, %v368_v20, 0  ;;  %v3488_v46 = vand.u32 2147483647, %v2430_v39  ;;  %v250_v48 = vmul.f32 5.9604645e-08, %v242_v31  ;;  %2249 = vlog2.f32 %v260_v35 }
  0x53   :  { %v2238_v47 = vpop.eup %2237  ;;  %v251_v18 = vmul.f32 5.9604645e-08, %v243_v37  ;;  %v252_v29 = vmul.f32 5.9604645e-08, %v244_v38  ;;  %v2137_v50 = vadd.s32 4294967169, %v465_v41  ;;  %v253_v51 = vmul.f32 5.9604645e-08, %v245_v15 }
  0x54   :  { %v2240_v49 = vpop.eup %2239  ;;  %v366_v52 = vor.u32 8388608, %v365_v42  ;;  %v372_v53 = vand.u32 31, %v370_v45  ;;  %v469_v54 = vor.u32 8388608, %v468_v43  ;;  %2251 = vlog2.f32 %v261_v44 }
  0x55   :  { %v2437_v55 = vmul.f32 6.2831855, %v249_v16  ;;  %v567_v32 = vand.u32 2139095040, %v2430_v39  ;;  %v2442_v56 = vand.u32 8388607, %v3488_v46  ;;  %v2450_v0 = vadd.s32 1, %v2137_v50 }
  0x56   :  { %v2242_v57 = vpop.eup %2241  ;;  %v263_v58 = vmul.f32 0.6931472, %v2238_v47  ;;  %v265_v59 = vmul.f32 0.6931472, %v2240_v49  ;;  %v2444_v60 = vmul.f32 6.2831855, %v250_v48 }
  0x57   :  { %v2446_v62 = vmul.f32 6.2831855, %v251_v18  ;;  %v2448_v63 = vmul.f32 6.2831855, %v252_v29  ;;  %v2452_v1 = vmul.f32 6.2831855, %v253_v51 }
  0x58   :  { %v2244_v61 = vpop.eup %2243  ;;  %v373_v34 = vsub.s32 32, %v372_v53  ;;  %v2454_v2 = vshll.u32 %v366_v52, 8  ;;  %v2456_v3 = vshll.u32 %v469_v54, 8  ;;  %v267_v4 = vmul.f32 0.6931472, %v2242_v57 }
  0x59   :  { %v2246_v33 = vpop.eup %2245  ;;  %v568_v5 = vshrl.u32 %v567_v32, 23  ;;  %v572_v6 = vor.u32 8388608, %v2442_v56  ;;  %v667_v7 = vand.u32 2147483647, %v2437_v55  ;;  %v269_v9 = vmul.f32 0.6931472, %v2244_v61 }
  0x5a   :  { %v2460_v10 = vmul.f32 -2.0, %v263_v58  ;;  %v2462_v11 = vmul.f32 -2.0, %v265_v59  ;;  %v371_v36 = vshrl.u32 %v370_v45, 5  ;;  %v271_v13 = vmul.f32 0.6931472, %v2246_v33 }
  0x5b   :  { %v2248_v12 = vpop.eup %2247  ;;  %v3503_v14 = vmov 683565275   ;;  %v3500_v19 = vmov 2475754826   ;;  %vm472_vm1 = vcmp.gt.s32.totalorder %v2450_v0, 0  ;;  %v2475_v42 = vmul.f32 -2.0, %v267_v4 }
  0x5c   :  { %v375_v17 = vshll.u32 %v3503_v14, %v372_v53  ;;  %v378_v20 = vshll.u32 %v3500_v19, %v372_v53  ;;  %v2250_v21 = vpop.eup %2249  ;;  %v376_v22 = vshrl.u32 %v3500_v19, %v373_v34  ;;  %v3498_v23 = vmov 2131351028  }
  0x5d   :  { %v379_v24 = vshrl.u32 %v3498_v23, %v373_v34  ;;  %v3505_v25 = vmov 2102212464   ;;  %v3513_v30 = vmov 920167782   ;;  %v381_v35 = vshll.u32 %v3498_v23, %v372_v53 }
  0x5e   :  { %v384_v28 = vshll.u32 %v3505_v25, %v372_v53  ;;  %v385_v31 = vshrl.u32 %v3513_v30, %v373_v34  ;;  %v382_v37 = vshrl.u32 %v3505_v25, %v373_v34  ;;  %v387_v38 = vshll.u32 %v3513_v30, %v372_v53  ;;  %v2252_v44 = vpop.eup %2251 }
  0x5f   :  { %v3490_v41 = vmov 1326507024   ;;  %v273_v16 = vmul.f32 0.6931472, %v2248_v12  ;;  %2253 = vrsqrt.f32 %v2460_v10  ;;  %v2141_v43 = vadd.s32 4294967169, %v568_v5 }
  0x60   :  { %v388_v15 = vshrl.u32 %v3490_v41, %v373_v34  ;;  %v275_v45 = vmul.f32 0.6931472, %v2250_v21  ;;  %v2478_v47 = vmul.f32 -2.0, %v269_v9  ;;  %v291_v48 = vand.u32 2147483648, %v2460_v10 }
  0x61   :  { %v374_v49 = vshrl.u32 %v3503_v14, %v373_v34  ;;  %v2482_v18 = vmul.f32 -2.0, %v271_v13  ;;  %v377_v29 = vor.u32 %v376_v22, %v375_v17  ;;  %v380_v50 = vor.u32 %v379_v24, %v378_v20 }
  0x62   :  { %v386_v51 = vor.u32 %v385_v31, %v384_v28  ;;  %2255 = vrsqrt.f32 %v2462_v11  ;;  %v383_v52 = vor.u32 %v382_v37, %v381_v35  ;;  %v389_v53 = vor.u32 %v388_v15, %v387_v38 }
  0x63   :  { %vm390_vm2 = vcmp.lt.s32.totalorder %v371_v36, 1  ;;  %v277_v54 = vmul.f32 0.6931472, %v2252_v44  ;;  %v2485_v32 = vmul.f32 -2.0, %v273_v16  ;;  %vm392_vm3 = vcmp.lt.s32.totalorder %v371_v36, 3 }
  0x64   :  { %vm393_vm4 = vcmp.lt.s32.totalorder %v371_v36, 4  ;;  %v298_v57 = vand.u32 2147483648, %v2462_v11  ;;  %vm391_vm5 = vcmp.lt.s32.totalorder %v371_v36, 2  ;;  %v394_v58 = vsel %vm390_vm2, %v374_v49, %v377_v29 }
  0x65   :  { %v395_v59 = vsel %vm393_vm4, %v383_v52, 2102212464  ;;  %v2488_v61 = vmul.f32 -2.0, %v275_v45  ;;  %v398_v34 = vsel %vm390_vm2, %v377_v29, %v380_v50  ;;  %v399_v4 = vsel %vm393_vm4, %v386_v51, 920167782 }
  0x66   :  { %v396_v33 = vsel %vm392_vm3, %v380_v50, %v395_v59  ;;  %2257 = vrsqrt.f32 %v2475_v42  ;;  %v400_v5 = vsel %vm392_vm3, %v383_v52, %v399_v4  ;;  %v402_v9 = vsel %vm390_vm2, %v380_v50, %v383_v52 }
  0x67   :  { %v403_v12 = vsel %vm393_vm4, %v389_v53, 1326507024  ;;  %v397_v13 = vsel %vm391_vm5, %v394_v58, %v396_v33  ;;  %v401_v17 = vsel %vm391_vm5, %v398_v34, %v400_v5  ;;  %v473_v21 = vsel %vm472_vm1, %v2450_v0, 0 }
  0x68   :  { %v404_v20 = vsel %vm392_vm3, %v386_v51, %v403_v12  ;;  %v2498_v24 = vmul.u32.u64.low %v2454_v2, %v401_v17  ;;  %v2499_v28 = vmul.u32.u64.high %v2454_v2, %v401_v17, %v2498_v24  ;;  %v474_v31 = vshrl.u32 %v473_v21, 5 }
  0x69   :  { %v405_v22 = vsel %vm391_vm5, %v402_v9, %v404_v20  ;;  %v2502_v35 = vpop.eup %2253  ;;  %v475_v15 = vand.u32 31, %v473_v21  ;;  %v574_v36 = vadd.s32 1, %v2141_v43  ;;  %v2508_v16 = vmul.f32 -2.0, %v277_v54 }
  0x6a   :  { %v2505_v37 = vmul.u32.u64.low %v2454_v2, %v405_v22  ;;  %v2506_v38 = vmul.u32.u64.high %v2454_v2, %v405_v22, %v2505_v37  ;;  %v413_v44 = vmul.u32 %v2454_v2, %v397_v13  ;;  %vm493_vm6 = vcmp.lt.s32.totalorder %v474_v31, 1 }
  0x6b   :  { %3517 = vst [vmem:[#allocation9_spill] sm:$0xff] %v2508_v16  ;;  %vm494_vm7 = vcmp.lt.s32.totalorder %v474_v31, 2  ;;  %v476_v0 = vsub.s32 32, %v475_v15  ;;  %v478_v45 = vshll.u32 %v3503_v14, %v475_v15  ;;  %v481_v49 = vshll.u32 %v3500_v19, %v475_v15 }
  0x6c   :  { %vm496_vm8 = vcmp.lt.s32.totalorder %v474_v31, 4  ;;  %v2513_v29 = vpop.eup %2255  ;;  %v416_v50 = vadd.s32 1, %v2499_v28  ;;  %v484_v51 = vshll.u32 %v3498_v23, %v475_v15  ;;  %v487_v43 = vshll.u32 %v3505_v25, %v475_v15 }
  0x6d   :  { %vm575_vm9 = vcmp.gt.s32.totalorder %v574_v36, 0  ;;  %vm415_vm10 = vc.u32 %v2506_v38, %v2498_v24  ;;  %v477_v2 = vshrl.u32 %v3503_v14, %v476_v0  ;;  %v479_v52 = vshrl.u32 %v3500_v19, %v476_v0 }
  0x6e   :  { %v490_v53 = vshll.u32 %v3513_v30, %v475_v15  ;;  %v417_v54 = vsel %vm415_vm10, %v416_v50, %v2499_v28  ;;  %v482_v58 = vshrl.u32 %v3498_v23, %v476_v0  ;;  %v485_v59 = vshrl.u32 %v3505_v25, %v476_v0 }
  0x6f   :  { %v488_v33 = vshrl.u32 %v3513_v30, %v476_v0  ;;  %v418_v34 = vadd.s32 %v417_v54, %v413_v44  ;;  %v480_v4 = vor.u32 %v479_v52, %v478_v45  ;;  %v491_v5 = vshrl.u32 %v3490_v41, %v476_v0 }
  0x70   :  { %v576_v9 = vsel %vm575_vm9, %v574_v36, 0  ;;  %v2528_v12 = vpop.eup %2257  ;;  %v483_v13 = vor.u32 %v482_v58, %v481_v49  ;;  %v486_v17 = vor.u32 %v485_v59, %v484_v51  ;;  %vm495_vm11 = vcmp.lt.s32.totalorder %v474_v31, 3 }
  0x71   :  { %v489_v20 = vor.u32 %v488_v33, %v487_v43  ;;  %v419_v21 = vadd.s32 536870912, %v418_v34  ;;  %v492_v22 = vor.u32 %v491_v5, %v490_v53  ;;  %v497_v28 = vsel %vm493_vm6, %v477_v2, %v480_v4 }
  0x72   :  { %v578_v37 = vand.u32 31, %v576_v9  ;;  %v498_v15 = vsel %vm496_vm8, %v486_v17, 2102212464  ;;  %v501_v50 = vsel %vm493_vm6, %v480_v4, %v483_v13  ;;  %v505_v0 = vsel %vm493_vm6, %v483_v13, %v486_v17 }
  0x73   :  { %v502_v44 = vsel %vm496_vm8, %v489_v20, 920167782  ;;  %v2535_v36 = vshrl.u32 %v419_v21, 30  ;;  %v499_v45 = vsel %vm495_vm11, %v483_v13, %v498_v15  ;;  %v506_v51 = vsel %vm496_vm8, %v492_v22, 1326507024 }
  0x74   :  { %v503_v49 = vsel %vm495_vm11, %v486_v17, %v502_v44  ;;  %v305_v43 = vand.u32 2147483648, %v2475_v42  ;;  %v507_v2 = vsel %vm495_vm11, %v489_v20, %v506_v51  ;;  %v579_v53 = vsub.s32 32, %v578_v37 }
  0x75   :  { %v504_v52 = vsel %vm494_vm7, %v501_v50, %v503_v49  ;;  %2259 = vrsqrt.f32 %v2478_v47  ;;  %v421_v54 = vshll.u32 %v2535_v36, 30  ;;  %v500_v58 = vsel %vm494_vm7, %v497_v28, %v499_v45 }
  0x76   :  { %v508_v59 = vsel %vm494_vm7, %v505_v0, %v507_v2  ;;  %v2549_v5 = vmul.u32.u64.low %v2456_v3, %v504_v52  ;;  %v2550_v13 = vmul.u32.u64.high %v2456_v3, %v504_v52, %v2549_v5  ;;  %v312_v17 = vand.u32 2147483648, %v2478_v47 }
  0x77   :  { %v2545_v33 = vmul.u32.u64.low %v2456_v3, %v508_v59  ;;  %v2546_v4 = vmul.u32.u64.high %v2456_v3, %v508_v59, %v2545_v33  ;;  %2261 = vrsqrt.f32 %v2482_v18  ;;  %v319_v20 = vand.u32 2147483648, %v2482_v18 }
  0x78   :  { %v2556_v21 = vsub.s32 %v418_v34, %v421_v54  ;;  %v581_v31 = vshll.u32 %v3503_v14, %v578_v37  ;;  %v582_v22 = vshrl.u32 %v3500_v19, %v579_v53  ;;  %v584_v28 = vshll.u32 %v3500_v19, %v578_v37 }
  0x79   :  { %v585_v15 = vshrl.u32 %v3498_v23, %v579_v53  ;;  %2263 = vrsqrt.f32 %v2485_v32  ;;  %v516_v44 = vmul.u32 %v2456_v3, %v500_v58  ;;  %v2565_v0 = vshrl.u32 %v576_v9, 5 }
  0x7a   :  { %v424_v50 = vsub.s32 0, %v2556_v21  ;;  %vm518_vm12 = vc.u32 %v2546_v4, %v2549_v5  ;;  %v519_v34 = vadd.s32 1, %v2550_v13  ;;  %v587_v45 = vshll.u32 %v3498_v23, %v578_v37 }
  0x7b   :  { %v588_v49 = vshrl.u32 %v3505_v25, %v579_v53  ;;  %v287_v51 = vmul.f32 %v2502_v35, %v2460_v10  ;;  %vm288_vm13 = vcmp.eq.f32.partialorder %v2460_v10, inf  ;;  %2265 = vrsqrt.f32 %v2488_v61 }
  0x7c   :  { %v2134_v3 = vmin.u32 %v424_v50, %v2556_v21  ;;  %v580_v9 = vshrl.u32 %v3503_v14, %v579_v53  ;;  %vm295_vm14 = vcmp.eq.f32.partialorder %v2462_v11, inf  ;;  %v520_v52 = vsel %vm518_vm12, %v519_v34, %v2550_v13 }
  0x7d   :  { %v583_v2 = vor.u32 %v582_v22, %v581_v31  ;;  %v586_v54 = vor.u32 %v585_v15, %v584_v28  ;;  %v590_v58 = vshll.u32 %v3505_v25, %v578_v37  ;;  %v521_v33 = vadd.s32 %v520_v52, %v516_v44 }
  0x7e   :  { %v426_v59 = vclz %v2134_v3  ;;  %v591_v35 = vshrl.u32 %v3513_v30, %v579_v53  ;;  %v593_v46 = vshll.u32 %v3513_v30, %v578_v37  ;;  %vm290_vm15 = vcmp.eq.f32.partialorder %v2460_v10, 0.0 }
  0x7f   :  { %v589_v27 = vor.u32 %v588_v49, %v587_v45  ;;  %v594_v50 = vshrl.u32 %v3490_v41, %v579_v53  ;;  %vm596_vm0 = vcmp.lt.s32.totalorder %v2565_v0, 1  ;;  %vm598_vm1 = vcmp.lt.s32.totalorder %v2565_v0, 3  ;;  %v2260_v13 = vpop.eup %2259 }
  0x80   :  { %v2135_v31 = vadd.s32 4294967294, %v426_v59  ;;  %v522_v22 = vadd.s32 536870912, %v521_v33  ;;  %v592_v28 = vor.u32 %v591_v35, %v590_v58  ;;  %vm599_vm2 = vcmp.lt.s32.totalorder %v2565_v0, 4 }
  0x81   :  { %v294_v15 = vmul.f32 %v2513_v29, %v2462_v11  ;;  %vm297_vm3 = vcmp.eq.f32.partialorder %v2462_v11, 0.0  ;;  %v595_v37 = vor.u32 %v594_v50, %v593_v46  ;;  %vm597_vm4 = vcmp.lt.s32.totalorder %v2565_v0, 2  ;;  %v2262_v44 = vpop.eup %2261 }
  0x82   :  { %v601_v53 = vsel %vm599_vm2, %v589_v27, 2102212464  ;;  %vm302_vm5 = vcmp.eq.f32.partialorder %v2475_v42, inf  ;;  %vm2136_vm6 = vcmp.lt.s32.totalorder %v2135_v31, 0  ;;  %v2595_v34 = vshrl.u32 %v522_v22, 30 }
  0x83   :  { %v604_v45 = vsel %vm596_vm0, %v583_v2, %v586_v54  ;;  %v605_v29 = vsel %vm599_vm2, %v592_v28, 920167782  ;;  %v414_v46 = vadd.s32 %v2498_v24, %v2506_v38  ;;  %v429_v49 = vsel %vm2136_vm6, 0, %v2135_v31  ;;  %v2264_v58 = vpop.eup %2263 }
  0x84   :  { %v600_v3 = vsel %vm596_vm0, %v580_v9, %v583_v2  ;;  %v606_v52 = vsel %vm598_vm1, %v589_v27, %v605_v29  ;;  %vm309_vm7 = vcmp.eq.f32.partialorder %v2478_v47, inf  ;;  %v434_v59 = vsub.s32 4294967266, %v429_v49 }
  0x85   :  { %v524_v35 = vshll.u32 %v2595_v34, 30  ;;  %v602_v50 = vsel %vm598_vm1, %v586_v54, %v601_v53  ;;  %v608_v22 = vsel %vm596_vm0, %v586_v54, %v589_v27  ;;  %vm316_vm8 = vcmp.eq.f32.partialorder %v2482_v18, inf  ;;  %v2266_v31 = vpop.eup %2265 }
  0x86   :  { %v430_v24 = vsub.s32 32, %v429_v49  ;;  %v607_v38 = vsel %vm597_vm4, %v604_v45, %v606_v52  ;;  %v609_v9 = vsel %vm599_vm2, %v595_v37, 1326507024  ;;  %v612_v2 = vshll.u32 %v572_v6, 8 }
  0x87   :  { %v326_v29 = vand.u32 2147483648, %v2485_v32  ;;  %v435_v41 = vadd.s32 127, %v434_v59  ;;  %v2621_v53 = vsub.s32 %v521_v33, %v524_v35  ;;  %v610_v27 = vsel %vm598_vm1, %v592_v28, %v609_v9 }
  0x88   :  { %v289_v54 = vsel %vm288_vm13, %v2460_v10, %v287_v51  ;;  %v611_v45 = vsel %vm597_vm4, %v608_v22, %v610_v27  ;;  %v2630_v37 = vmul.u32.u64.low %v612_v2, %v607_v38  ;;  %v2631_v52 = vmul.u32.u64.high %v612_v2, %v607_v38, %v2630_v37 }
  0x89   :  { %v296_v56 = vsel %vm295_vm14, %v2462_v11, %v294_v15  ;;  %v301_v6 = vmul.f32 %v2528_v12, %v2475_v42  ;;  %vm304_vm9 = vcmp.eq.f32.partialorder %v2475_v42, 0.0  ;;  %v527_v33 = vsub.s32 0, %v2621_v53 }
  0x8a   :  { %v603_v51 = vsel %vm597_vm4, %v600_v3, %v602_v50  ;;  %vm311_vm10 = vcmp.eq.f32.partialorder %v2478_v47, 0.0  ;;  %vm318_vm11 = vcmp.eq.f32.partialorder %v2482_v18, 0.0  ;;  %v431_v28 = vshll.u32 %v2556_v21, %v429_v49 }
  0x8b   :  { %v432_v59 = vshrl.u32 %v414_v46, %v430_v24  ;;  %v2646_v35 = vmul.u32.u64.low %v612_v2, %v611_v45  ;;  %v2647_v22 = vmul.u32.u64.high %v612_v2, %v611_v45, %v2646_v35  ;;  %v292_v12 = vsel %vm290_vm15, %v291_v48, %v289_v54 }
  0x8c   :  { %vm323_vm12 = vcmp.eq.f32.partialorder %v2485_v32, inf  ;;  %vm330_vm13 = vcmp.eq.f32.partialorder %v2488_v61, inf  ;;  %v436_v0 = vshll.u32 %v435_v41, 23  ;;  %v2138_v15 = vmin.u32 %v527_v33, %v2621_v53 }
  0x8d   :  { %v308_v3 = vmul.f32 %v2260_v13, %v2478_v47  ;;  %v333_v21 = vand.u32 2147483648, %v2488_v61  ;;  %v619_v46 = vmul.u32 %v612_v2, %v603_v51  ;;  %v622_v49 = vadd.s32 1, %v2631_v52 }
  0x8e   :  { %v299_v10 = vsel %vm297_vm3, %v298_v57, %v296_v56  ;;  %v315_v48 = vmul.f32 %v2262_v44, %v2482_v18  ;;  %v529_v50 = vclz %v2138_v15  ;;  %v670_v24 = vand.u32 2139095040, %v2437_v55 }
  0x8f   :  { %v303_v41 = vsel %vm302_vm5, %v2475_v42, %v301_v6  ;;  %v2668_v13 = vmul.f32 0.1, %v292_v12  ;;  %vm360_vm14 = vcmp.lt.s32.totalorder %v2418_v40, 0  ;;  %v433_v38 = vor.u32 %v432_v59, %v431_v28 }
  0x90   :  { %vm621_vm15 = vc.u32 %v2647_v22, %v2630_v37  ;;  %vm325_vm0 = vcmp.eq.f32.partialorder %v2485_v32, 0.0  ;;  %v437_v11 = vor.u32 4788187, %v436_v0  ;;  %v2139_v57 = vadd.s32 4294967294, %v529_v50 }
  0x91   :  { %3518 = vst [vmem:[#allocation10_spill] sm:$0xff] %v2668_v13  ;;  %v623_v44 = vsel %vm621_vm15, %v622_v49, %v2631_v52  ;;  %v671_v9 = vshrl.u32 %v670_v24, 23  ;;  %v310_v2 = vsel %vm309_vm7, %v2478_v47, %v308_v3  ;;  %v322_v27 = vmul.f32 %v2264_v58, %v2485_v32 }
  0x92   :  { %vm332_vm1 = vcmp.eq.f32.partialorder %v2488_v61, 0.0  ;;  %v2680_v54 = vmul.f32 0.1, %v299_v10  ;;  %v624_v45 = vadd.s32 %v623_v44, %v619_v46  ;;  %v317_v56 = vsel %vm316_vm8, %v2482_v18, %v315_v48 }
  0x93   :  { %v517_v6 = vadd.s32 %v2549_v5, %v2546_v4  ;;  %vm2140_vm2 = vcmp.lt.s32.totalorder %v2139_v57, 0  ;;  %v2145_v52 = vadd.s32 4294967169, %v671_v9  ;;  %v329_v33 = vmul.f32 %v2266_v31, %v2488_v61 }
  0x94   :  { %3519 = vst [vmem:[#allocation11_spill] sm:$0xff] %v2680_v54  ;;  %vm2690_vm3 = vcmp.le.f32.partialorder %v358_v26, 0.7853982  ;;  %v444_v51 = vsub.s32 4, %v2535_v36  ;;  %v532_v28 = vsel %vm2140_vm2, 0, %v2139_v57  ;;  %v625_v59 = vadd.s32 536870912, %v624_v45 }
  0x95   :  { %v438_v35 = vand.u32 2147483647, %v437_v11  ;;  %v440_v12 = vcvt.s32.f32 %v433_v38  ;;  %v533_v0 = vsub.s32 32, %v532_v28  ;;  %v537_v15 = vsub.s32 4294967266, %v532_v28 }
  0x96   :  { %v306_v4 = vsel %vm304_vm9, %v305_v43, %v303_v41  ;;  %v534_v5 = vshll.u32 %v2621_v53, %v532_v28  ;;  %v2700_v31 = vshrl.u32 %v625_v59, 30  ;;  %v677_v26 = vadd.s32 1, %v2145_v52 }
  0x97   :  { %v313_v3 = vsel %vm311_vm10, %v312_v17, %v310_v2  ;;  %v320_v46 = vsel %vm318_vm11, %v319_v20, %v317_v56  ;;  %v535_v49 = vshrl.u32 %v517_v6, %v533_v0  ;;  %v538_v10 = vadd.s32 127, %v537_v15 }
  0x98   :  { %v324_v42 = vsel %vm323_vm12, %v2485_v32, %v322_v27  ;;  %v331_v43 = vsel %vm330_vm13, %v2488_v61, %v329_v33  ;;  %vm463_vm4 = vcmp.lt.s32.totalorder %v2425_v8, 0  ;;  %v627_v47 = vshll.u32 %v2700_v31, 30 }
  0x99   :  { %vm678_vm5 = vcmp.gt.s32.totalorder %v677_v26, 0  ;;  %v441_v17 = vmul.f32 %v440_v12, %v438_v35  ;;  %v445_v18 = vsel %vm360_vm14, %v444_v51, %v2535_v36  ;;  %v539_v20 = vshll.u32 %v538_v10, 23 }
  0x9a   :  { %v679_v53 = vsel %vm678_vm5, %v677_v26, 0  ;;  %v536_v48 = vor.u32 %v535_v49, %v534_v5  ;;  %v2721_v50 = vsub.s32 %v624_v45, %v627_v47  ;;  %v773_v41 = vand.u32 2139095040, %v2444_v60 }
  0x9b   :  { %v681_v24 = vand.u32 31, %v679_v53  ;;  %2267 = vrsqrt.f32 %v2508_v16  ;;  %v2725_v38 = vmul.f32 0.1, %v306_v4  ;;  %v2727_v11 = vmul.f32 0.1, %v313_v3 }
  0x9c   :  { %v540_v57 = vor.u32 4788187, %v539_v20  ;;  %v2733_v36 = vsel %vm325_vm0, %v326_v29, %v324_v42  ;;  %v2735_v44 = vmul.f32 0.1, %v320_v46  ;;  %v630_v9 = vsub.s32 0, %v2721_v50 }
  0x9d   :  { %3522 = vst [vmem:[#allocation12_spill] sm:$0xff] %v2725_v38  ;;  %v682_v2 = vsub.s32 32, %v681_v24  ;;  %v2742_v27 = vsel %vm332_vm1, %v333_v21, %v331_v43  ;;  %v2746_v45 = vsel %vm2690_vm3, 0, %v445_v18  ;;  %v547_v56 = vsub.s32 4, %v2595_v34 }
  0x9e   :  { %v674_v32 = vand.u32 8388607, %v667_v7  ;;  %v442_v29 = vxor.u32 2147483648, %v441_v17  ;;  %v543_v6 = vcvt.s32.f32 %v536_v48  ;;  %v2142_v52 = vmin.u32 %v630_v9, %v2721_v50 }
  0x9f   :  { %v774_v33 = vshrl.u32 %v773_v41, 23  ;;  %v541_v51 = vand.u32 2147483647, %v540_v57  ;;  %v684_v28 = vshll.u32 %v3503_v14, %v681_v24  ;;  %v687_v61 = vshll.u32 %v3500_v19, %v681_v24 }
  0xa0   :  { %v693_v21 = vshll.u32 %v3505_v25, %v681_v24  ;;  %v632_v59 = vclz %v2142_v52  ;;  %v685_v35 = vshrl.u32 %v3500_v19, %v682_v2  ;;  %v688_v12 = vshrl.u32 %v3498_v23, %v682_v2 }
  0xa1   :  { %v694_v0 = vshrl.u32 %v3513_v30, %v682_v2  ;;  %v2761_v15 = vsel %vm463_vm4, %v547_v56, %v2595_v34  ;;  %v680_v4 = vshrl.u32 %v679_v53, 5  ;;  %v690_v5 = vshll.u32 %v3498_v23, %v681_v24 }
  0xa2   :  { %v691_v26 = vshrl.u32 %v3505_v25, %v682_v2  ;;  %v2143_v3 = vadd.s32 4294967294, %v632_v59  ;;  %v675_v46 = vor.u32 8388608, %v674_v32  ;;  %v696_v49 = vshll.u32 %v3513_v30, %v681_v24 }
  0xa3   :  { %v3523_v10 = vmov 1326507024   ;;  %v443_v43 = vsel %vm360_vm14, %v442_v29, %v441_v17  ;;  %v544_v47 = vmul.f32 %v543_v6, %v541_v51  ;;  %v620_v18 = vadd.s32 %v2630_v37, %v2647_v22 }
  0xa4   :  { %v697_v42 = vshrl.u32 %v3523_v10, %v682_v2  ;;  %v2149_v34 = vadd.s32 4294967169, %v774_v33  ;;  %vm2144_vm6 = vcmp.lt.s32.totalorder %v2143_v3, 0  ;;  %v686_v20 = vor.u32 %v685_v35, %v684_v28 }
  0xa5   :  { %v689_v53 = vor.u32 %v688_v12, %v687_v61  ;;  %v695_v48 = vor.u32 %v694_v0, %v693_v21  ;;  %v2771_v41 = vpop.eup %2267  ;;  %v3525_v57 = vand.u32 2147483647, %v2425_v8  ;;  %v635_v9 = vsel %vm2144_vm6, 0, %v2143_v3 }
  0xa6   :  { %3524 = vst [vmem:[#allocation13_spill] sm:$0xff] %v2771_v41  ;;  %v683_v17 = vshrl.u32 %v3503_v14, %v682_v2  ;;  %v692_v56 = vor.u32 %v691_v26, %v690_v5  ;;  %vm699_vm8 = vcmp.lt.s32.totalorder %v680_v4, 1  ;;  %v446_v37 = vsel %vm2690_vm3, %v2418_v40, %v443_v43 }
  0xa7   :  { %vm2775_vm7 = vcmp.le.f32.partialorder %v3525_v57, 0.7853982  ;;  %v698_v22 = vor.u32 %v697_v42, %v696_v49  ;;  %vm701_vm9 = vcmp.lt.s32.totalorder %v680_v4, 3  ;;  %v715_v32 = vshll.u32 %v675_v46, 8 }
  0xa8   :  { %v545_v29 = vxor.u32 2147483648, %v544_v47  ;;  %vm700_vm10 = vcmp.lt.s32.totalorder %v680_v4, 2  ;;  %vm702_vm11 = vcmp.lt.s32.totalorder %v680_v4, 4  ;;  %v780_v6 = vadd.s32 1, %v2149_v34 }
  0xa9   :  { %v640_v52 = vsub.s32 4294967266, %v635_v9  ;;  %v704_v33 = vsel %vm702_vm11, %v692_v56, 2102212464  ;;  %v707_v51 = vsel %vm699_vm8, %v686_v20, %v689_v53  ;;  %v708_v28 = vsel %vm702_vm11, %v695_v48, 920167782 }
  0xaa   :  { %v703_v2 = vsel %vm699_vm8, %v683_v17, %v686_v20  ;;  %v705_v61 = vsel %vm701_vm9, %v689_v53, %v704_v33  ;;  %v709_v21 = vsel %vm701_vm9, %v692_v56, %v708_v28  ;;  %v711_v58 = vsel %vm699_vm8, %v689_v53, %v692_v56 }
  0xab   :  { %2269 = vcosq.f32 %v446_v37  ;;  %v710_v59 = vsel %vm700_vm10, %v707_v51, %v709_v21  ;;  %v712_v35 = vsel %vm702_vm11, %v698_v22, 1326507024  ;;  %v3492_v12 = vand.u32 2147483647, %v2444_v60 }
  0xac   :  { %v636_v0 = vsub.s32 32, %v635_v9  ;;  %v713_v5 = vsel %vm701_vm9, %v695_v48, %v712_v35  ;;  %v2791_v26 = vmul.u32.u64.low %v715_v32, %v710_v59  ;;  %v2792_v3 = vmul.u32.u64.high %v715_v32, %v710_v59, %v2791_v26 }
  0xad   :  { %v641_v46 = vadd.s32 127, %v640_v52  ;;  %v706_v49 = vsel %vm700_vm10, %v703_v2, %v705_v61  ;;  %v714_v42 = vsel %vm700_vm10, %v711_v58, %v713_v5  ;;  %vm781_vm12 = vcmp.gt.s32.totalorder %v780_v6, 0 }
  0xae   :  { %v546_v43 = vsel %vm463_vm4, %v545_v29, %v544_v47  ;;  %v2799_v34 = vmul.u32.u64.low %v715_v32, %v714_v42  ;;  %v2800_v20 = vmul.u32.u64.high %v715_v32, %v714_v42, %v2799_v34  ;;  %v782_v53 = vsel %vm781_vm12, %v780_v6, 0 }
  0xaf   :  { %v2803_v57 = vmul.f32 0.1, %v2733_v36  ;;  %2271 = vsinq.f32 %v446_v37  ;;  %v2806_v48 = vand.u32 3, %v2746_v45  ;;  %v784_v17 = vand.u32 31, %v782_v53 }
  0xb0   :  { %v637_v56 = vshll.u32 %v2721_v50, %v635_v9  ;;  %v638_v4 = vshrl.u32 %v620_v18, %v636_v0  ;;  %v722_v22 = vmul.u32 %v715_v32, %v706_v49  ;;  %v725_v52 = vadd.s32 1, %v2792_v3 }
  0xb1   :  { %v549_v47 = vsel %vm2775_vm7, %v2425_v8, %v546_v43  ;;  %v2816_v36 = vsel %vm2775_vm7, 0, %v2761_v15  ;;  %v642_v37 = vshll.u32 %v641_v46, 23  ;;  %v785_v29 = vsub.s32 32, %v784_v17 }
  0xb2   :  { %v2819_v6 = vmul.f32 0.1, %v2742_v27  ;;  %v2822_v50 = vand.u32 3, %v2816_v36  ;;  %vm724_vm13 = vc.u32 %v2800_v20, %v2791_v26  ;;  %v777_v18 = vand.u32 8388607, %v3492_v12 }
  0xb3   :  { %v726_v9 = vsel %vm724_vm13, %v725_v52, %v2792_v3  ;;  %v787_v24 = vshll.u32 %v3503_v14, %v784_v17  ;;  %v788_v15 = vshrl.u32 %v3500_v19, %v785_v29  ;;  %v790_v32 = vshll.u32 %v3500_v19, %v784_v17 }
  0xb4   :  { %3528 = vst [vmem:[#allocation14_spill] sm:$0xff] %v2819_v6  ;;  %2273 = vcosq.f32 %v549_v47  ;;  %v639_v27 = vor.u32 %v638_v4, %v637_v56  ;;  %v727_v33 = vadd.s32 %v726_v9, %v722_v22  ;;  %v791_v51 = vshrl.u32 %v3498_v23, %v785_v29 }
  0xb5   :  { %v2833_v28 = vpop.eup %2269  ;;  %vm456_vm14 = vcmp.eq.s32.totalorder %v2806_v48, 2  ;;  %v643_v2 = vor.u32 4788187, %v642_v37  ;;  %v783_v61 = vshrl.u32 %v782_v53, 5  ;;  %v793_v21 = vshll.u32 %v3498_v23, %v784_v17 }
  0xb6   :  { %v794_v58 = vshrl.u32 %v3505_v25, %v785_v29  ;;  %vm453_vm15 = vcmp.eq.s32.totalorder %v2806_v48, 0  ;;  %2275 = vsinq.f32 %v549_v47  ;;  %v650_v59 = vsub.s32 4, %v2700_v31 }
  0xb7   :  { %v728_v35 = vadd.s32 536870912, %v727_v33  ;;  %v778_v0 = vor.u32 8388608, %v777_v18  ;;  %vm566_vm0 = vcmp.lt.s32.totalorder %v2430_v39, 0  ;;  %v789_v5 = vor.u32 %v788_v15, %v787_v24 }
  0xb8   :  { %v792_v3 = vor.u32 %v791_v51, %v790_v32  ;;  %v796_v46 = vshll.u32 %v3505_v25, %v784_v17  ;;  %v797_v49 = vshrl.u32 %v3513_v30, %v785_v29  ;;  %v646_v42 = vcvt.s32.f32 %v639_v27 }
  0xb9   :  { %v2843_v43 = vshrl.u32 %v728_v35, 30  ;;  %v799_v34 = vshll.u32 %v3513_v30, %v784_v17  ;;  %v800_v53 = vshrl.u32 %v3523_v10, %v785_v29  ;;  %v2847_v56 = vpop.eup %2271  ;;  %v644_v4 = vand.u32 2147483647, %v643_v2 }
  0xba   :  { %v795_v22 = vor.u32 %v794_v58, %v793_v21  ;;  %v798_v52 = vor.u32 %v797_v49, %v796_v46  ;;  %vm802_vm1 = vcmp.lt.s32.totalorder %v783_v61, 1  ;;  %v786_v37 = vshrl.u32 %v3503_v14, %v785_v29 }
  0xbb   :  { %v730_v47 = vshll.u32 %v2843_v43, 30  ;;  %v801_v18 = vor.u32 %v800_v53, %v799_v34  ;;  %vm804_vm2 = vcmp.lt.s32.totalorder %v783_v61, 3  ;;  %v3529_v9 = vand.u32 2147483647, %v2430_v39 }
  0xbc   :  { %vm803_vm4 = vcmp.lt.s32.totalorder %v783_v61, 2  ;;  %vm805_vm5 = vcmp.lt.s32.totalorder %v783_v61, 4  ;;  %v810_v17 = vsel %vm802_vm1, %v789_v5, %v792_v3  ;;  %v818_v15 = vshll.u32 %v778_v0, 8 }
  0xbd   :  { %vm2853_vm3 = vcmp.le.f32.partialorder %v3529_v9, 0.7853982  ;;  %v3495_v32 = vxor.u32 2147483648, %v2833_v28  ;;  %v2859_v27 = vsub.s32 %v727_v33, %v730_v47  ;;  %v807_v51 = vsel %vm805_vm5, %v795_v22, 2102212464 }
  0xbe   :  { %v811_v2 = vsel %vm805_vm5, %v798_v52, 920167782  ;;  %v3496_v29 = vxor.u32 2147483648, %v2847_v56  ;;  %v647_v21 = vmul.f32 %v646_v42, %v644_v4  ;;  %v815_v35 = vsel %vm805_vm5, %v801_v18, 1326507024  ;;  %v2863_v46 = vpop.eup %2273 }
  0xbf   :  { %v812_v58 = vsel %vm804_vm2, %v795_v22, %v811_v2  ;;  %v733_v49 = vsub.s32 0, %v2859_v27  ;;  %v806_v34 = vsel %vm802_vm1, %v786_v37, %v789_v5  ;;  %v814_v53 = vsel %vm802_vm1, %v792_v3, %v795_v22 }
  0xc0   :  { %v813_v0 = vsel %vm803_vm4, %v810_v17, %v812_v58  ;;  %v808_v33 = vsel %vm804_vm2, %v792_v3, %v807_v51  ;;  %v816_v47 = vsel %vm804_vm2, %v798_v52, %v815_v35  ;;  %v2875_v42 = vpop.eup %2275  ;;  %vm452_vm6 = vcmp.lt.s32.totalorder %v2806_v48, 2 }
  0xc1   :  { %v2871_v9 = vmul.u32.u64.low %v818_v15, %v813_v0  ;;  %v2872_v12 = vmul.u32.u64.high %v818_v15, %v813_v0, %v2871_v9  ;;  %v458_v5 = vsel %vm456_vm14, %v3495_v32, %v2847_v56  ;;  %v651_v3 = vsel %vm566_vm0, %v650_v59, %v2700_v31 }
  0xc2   :  { %v2146_v4 = vmin.u32 %v733_v49, %v2859_v27  ;;  %v455_v22 = vsel %vm453_vm15, %v2833_v28, %v3496_v29  ;;  %vm555_vm7 = vcmp.lt.s32.totalorder %v2822_v50, 2  ;;  %v648_v52 = vxor.u32 2147483648, %v647_v21 }
  0xc3   :  { %v817_v37 = vsel %vm803_vm4, %v814_v53, %v816_v47  ;;  %v876_v18 = vand.u32 2139095040, %v2446_v62  ;;  %vm450_vm8 = vweird.f32 %v2418_v40  ;;  %v809_v31 = vsel %vm803_vm4, %v806_v34, %v808_v33 }
  0xc4   :  { %v735_v17 = vclz %v2146_v4  ;;  %v2897_v59 = vmul.u32.u64.low %v818_v15, %v817_v37  ;;  %v2898_v51 = vmul.u32.u64.high %v818_v15, %v817_v37, %v2897_v59  ;;  %vm556_vm9 = vcmp.eq.s32.totalorder %v2822_v50, 0 }
  0xc5   :  { %vm559_vm10 = vcmp.eq.s32.totalorder %v2822_v50, 2  ;;  %v828_v2 = vadd.s32 1, %v2872_v12  ;;  %v877_v58 = vshrl.u32 %v876_v18, 23  ;;  %v459_v35 = vsel %vm452_vm6, %v455_v22, %v458_v5 }
  0xc6   :  { %v2907_v49 = vsel %vm2853_vm3, 0, %v651_v3  ;;  %vm669_vm11 = vcmp.lt.s32.totalorder %v2437_v55, 0  ;;  %v2147_v61 = vadd.s32 4294967294, %v735_v17  ;;  %v3497_v34 = vand.u32 2147483647, %v2446_v62 }
  0xc7   :  { %v3494_v0 = vxor.u32 2147483648, %v2875_v42  ;;  %v3493_v53 = vxor.u32 2147483648, %v2863_v46  ;;  %v825_v33 = vmul.u32 %v818_v15, %v809_v31  ;;  %v2153_v47 = vadd.s32 4294967169, %v877_v58 }
  0xc8   :  { %v649_v4 = vsel %vm566_vm0, %v648_v52, %v647_v21  ;;  %v723_v48 = vadd.s32 %v2791_v26, %v2800_v20  ;;  %vm2148_vm12 = vcmp.lt.s32.totalorder %v2147_v61, 0  ;;  %vm827_vm13 = vc.u32 %v2898_v51, %v2871_v9 }
  0xc9   :  { %v561_v5 = vsel %vm559_vm10, %v3493_v53, %v2875_v42  ;;  %v738_v3 = vsel %vm2148_vm12, 0, %v2147_v61  ;;  %v829_v15 = vsel %vm827_vm13, %v828_v2, %v2872_v12  ;;  %v883_v22 = vadd.s32 1, %v2153_v47 }
  0xca   :  { %v558_v26 = vsel %vm556_vm9, %v2863_v46, %v3494_v0  ;;  %v739_v20 = vsub.s32 32, %v738_v3  ;;  %v740_v21 = vshll.u32 %v2859_v27, %v738_v3  ;;  %v743_v52 = vsub.s32 4294967266, %v738_v3 }
  0xcb   :  { %v652_v37 = vsel %vm2853_vm3, %v2430_v39, %v649_v4  ;;  %vm2936_vm14 = vcmp.le.f32.partialorder %v667_v7, 0.7853982  ;;  %v753_v12 = vsub.s32 4, %v2843_v43  ;;  %v830_v17 = vadd.s32 %v829_v15, %v825_v33 }
  0xcc   :  { %vm884_vm15 = vcmp.gt.s32.totalorder %v883_v22, 0  ;;  %v741_v31 = vshrl.u32 %v723_v48, %v739_v20  ;;  %v744_v59 = vadd.s32 127, %v743_v52  ;;  %v880_v27 = vand.u32 8388607, %v3497_v34 }
  0xcd   :  { %v885_v2 = vsel %vm884_vm15, %v883_v22, 0  ;;  %v2945_v24 = vsel %vm450_vm8, nan, %v459_v35  ;;  %v2948_v58 = vand.u32 3, %v2907_v49  ;;  %v831_v7 = vadd.s32 536870912, %v830_v17 }
  0xce   :  { %v887_v61 = vand.u32 31, %v885_v2  ;;  %v2952_v47 = vsel %vm555_vm7, %v558_v26, %v561_v5  ;;  %2277 = vcosq.f32 %v652_v37  ;;  %v742_v33 = vor.u32 %v741_v31, %v740_v21 }
  0xcf   :  { %v745_v4 = vshll.u32 %v744_v59, 23  ;;  %v754_v48 = vsel %vm669_vm11, %v753_v12, %v2843_v43  ;;  %v2957_v3 = vshrl.u32 %v831_v7, 30  ;;  %v979_v15 = vand.u32 2139095040, %v2448_v63 }
  0xd0   :  { %v888_v35 = vsub.s32 32, %v887_v61  ;;  %v749_v20 = vcvt.s32.f32 %v742_v33  ;;  %v881_v52 = vor.u32 8388608, %v880_v27  ;;  %v886_v53 = vshrl.u32 %v885_v2, 5 }
  0xd1   :  { %v746_v22 = vor.u32 4788187, %v745_v4  ;;  %v833_v50 = vshll.u32 %v2957_v3, 30  ;;  %v890_v5 = vshll.u32 %v3503_v14, %v887_v61  ;;  %v893_v21 = vshll.u32 %v3500_v19, %v887_v61 }
  0xd2   :  { %v891_v26 = vshrl.u32 %v3500_v19, %v888_v35  ;;  %v894_v43 = vshrl.u32 %v3498_v23, %v888_v35  ;;  %v899_v12 = vshll.u32 %v3505_v25, %v887_v61  ;;  %v900_v59 = vshrl.u32 %v3513_v30, %v888_v35 }
  0xd3   :  { %v747_v31 = vand.u32 2147483647, %v746_v22  ;;  %v2967_v7 = vsub.s32 %v830_v17, %v833_v50  ;;  %v896_v27 = vshll.u32 %v3498_v23, %v887_v61  ;;  %v897_v2 = vshrl.u32 %v3505_v25, %v888_v35 }
  0xd4   :  { %v980_v33 = vshrl.u32 %v979_v15, 23  ;;  %2279 = vsinq.f32 %v652_v37  ;;  %v2973_v0 = vsel %vm2936_vm14, 0, %v754_v48  ;;  %v902_v22 = vshll.u32 %v3513_v30, %v887_v61 }
  0xd5   :  { %v750_v4 = vmul.f32 %v749_v20, %v747_v31  ;;  %v836_v32 = vsub.s32 0, %v2967_v7  ;;  %v892_v29 = vor.u32 %v891_v26, %v890_v5  ;;  %v895_v34 = vor.u32 %v894_v43, %v893_v21 }
  0xd6   :  { %v903_v17 = vshrl.u32 %v3523_v10, %v888_v35  ;;  %v889_v23 = vshrl.u32 %v3503_v14, %v888_v35  ;;  %v901_v19 = vor.u32 %v900_v59, %v899_v12  ;;  %vm905_vm0 = vcmp.lt.s32.totalorder %v886_v53, 1 }
  0xd7   :  { %v751_v50 = vxor.u32 2147483648, %v750_v4  ;;  %v2150_v37 = vmin.u32 %v836_v32, %v2967_v7  ;;  %v898_v15 = vor.u32 %v897_v2, %v896_v27  ;;  %v2980_v20 = vshll.u32 %v881_v52, 8 }
  0xd8   :  { %v2157_v48 = vadd.s32 4294967169, %v980_v33  ;;  %v2982_v31 = vpop.eup %2277  ;;  %v904_v61 = vor.u32 %v903_v17, %v902_v22  ;;  %vm906_vm1 = vcmp.lt.s32.totalorder %v886_v53, 2  ;;  %vm907_vm2 = vcmp.lt.s32.totalorder %v886_v53, 3 }
  0xd9   :  { %vm908_vm3 = vcmp.lt.s32.totalorder %v886_v53, 4  ;;  %v752_v5 = vsel %vm669_vm11, %v751_v50, %v750_v4  ;;  %v838_v26 = vclz %v2150_v37  ;;  %v913_v35 = vsel %vm905_vm0, %v892_v29, %v895_v34 }
  0xda   :  { %v910_v21 = vsel %vm908_vm3, %v898_v15, 2102212464  ;;  %v826_v32 = vadd.s32 %v2871_v9, %v2898_v51  ;;  %v909_v52 = vsel %vm905_vm0, %v889_v23, %v892_v29  ;;  %v914_v43 = vsel %vm908_vm3, %v901_v19, 920167782 }
  0xdb   :  { %v3502_v12 = vand.u32 2147483647, %v2448_v63  ;;  %v2151_v59 = vadd.s32 4294967294, %v838_v26  ;;  %v911_v27 = vsel %vm907_vm2, %v895_v34, %v910_v21  ;;  %v915_v2 = vsel %vm907_vm2, %v898_v15, %v914_v43 }
  0xdc   :  { %v917_v33 = vsel %vm905_vm0, %v895_v34, %v898_v15  ;;  %v755_v4 = vsel %vm2936_vm14, %v2437_v55, %v752_v5  ;;  %v916_v22 = vsel %vm906_vm1, %v913_v35, %v915_v2  ;;  %v918_v17 = vsel %vm908_vm3, %v904_v61, 1326507024 }
  0xdd   :  { %v986_v9 = vadd.s32 1, %v2157_v48  ;;  %vm2152_vm4 = vcmp.lt.s32.totalorder %v2151_v59, 0  ;;  %v919_v23 = vsel %vm907_vm2, %v901_v19, %v918_v17  ;;  %v912_v34 = vsel %vm906_vm1, %v909_v52, %v911_v27 }
  0xde   :  { %v3000_v29 = vmul.u32.u64.low %v2980_v20, %v916_v22  ;;  %v3001_v51 = vmul.u32.u64.high %v2980_v20, %v916_v22, %v3000_v29  ;;  %v3004_v50 = vpop.eup %2279  ;;  %v841_v37 = vsel %vm2152_vm4, 0, %v2151_v59  ;;  %v920_v18 = vsel %vm906_vm1, %v917_v33, %v919_v23 }
  0xdf   :  { %vm987_vm5 = vcmp.gt.s32.totalorder %v986_v9, 0  ;;  %vm659_vm6 = vcmp.eq.s32.totalorder %v2948_v58, 0  ;;  %vm662_vm7 = vcmp.eq.s32.totalorder %v2948_v58, 2  ;;  %v842_v15 = vsub.s32 32, %v841_v37 }
  0xe0   :  { %v843_v19 = vshll.u32 %v2967_v7, %v841_v37  ;;  %v846_v48 = vsub.s32 4294967266, %v841_v37  ;;  %v988_v61 = vsel %vm987_vm5, %v986_v9, 0  ;;  %v3012_v5 = vand.u32 3, %v2973_v0 }
  0xe1   :  { %v3015_v26 = vmul.u32.u64.low %v2980_v20, %v920_v18  ;;  %v3016_v21 = vmul.u32.u64.high %v2980_v20, %v920_v18, %v3015_v26  ;;  %v990_v35 = vand.u32 31, %v988_v61  ;;  %v844_v52 = vshrl.u32 %v826_v32, %v842_v15 }
  0xe2   :  { %v847_v43 = vadd.s32 127, %v846_v48  ;;  %v931_v59 = vadd.s32 1, %v3001_v51  ;;  %2281 = vcosq.f32 %v755_v4  ;;  %vm772_vm9 = vcmp.lt.s32.totalorder %v2444_v60, 0 }
  0xe3   :  { %v928_v7 = vmul.u32 %v2980_v20, %v912_v34  ;;  %v991_v2 = vsub.s32 32, %v990_v35  ;;  %vm658_vm10 = vcmp.lt.s32.totalorder %v2948_v58, 2  ;;  %2283 = vsinq.f32 %v755_v4 }
  0xe4   :  { %v845_v33 = vor.u32 %v844_v52, %v843_v19  ;;  %v848_v22 = vshll.u32 %v847_v43, 23  ;;  %v983_v17 = vand.u32 8388607, %v3502_v12  ;;  %vm930_vm11 = vc.u32 %v3016_v21, %v3000_v29 }
  0xe5   :  { %v993_v32 = vshll.u32 %v3503_v14, %v990_v35  ;;  %v3534_v9 = vmov 2475754826   ;;  %v1002_v37 = vshll.u32 %v3505_v25, %v990_v35  ;;  %v3535_v20 = vand.u32 2147483647, %v2444_v60 }
  0xe6   :  { %v996_v23 = vshll.u32 %v3534_v9, %v990_v35  ;;  %v849_v4 = vor.u32 4788187, %v848_v22  ;;  %v852_v18 = vcvt.s32.f32 %v845_v33  ;;  %v932_v15 = vsel %vm930_vm11, %v931_v59, %v3001_v51 }
  0xe7   :  { %vm3033_vm12 = vcmp.le.f32.partialorder %v3535_v20, 0.7853982  ;;  %v994_v19 = vshrl.u32 %v3534_v9, %v991_v2  ;;  %v856_v48 = vsub.s32 4, %v2957_v3  ;;  %v933_v26 = vadd.s32 %v932_v15, %v928_v7 }
  0xe8   :  { %v3040_v52 = vshrl.u32 %v988_v61, 5  ;;  %v3538_v43 = vmov 2131351028   ;;  %vm765_vm13 = vcmp.eq.s32.totalorder %v3012_v5, 2  ;;  %v850_v14 = vand.u32 2147483647, %v849_v4 }
  0xe9   :  { %v997_v12 = vshrl.u32 %v3538_v43, %v991_v2  ;;  %v999_v20 = vshll.u32 %v3538_v43, %v990_v35  ;;  %v1000_v53 = vshrl.u32 %v3505_v25, %v991_v2  ;;  %v1003_v33 = vshrl.u32 %v3513_v30, %v991_v2 }
  0xea   :  { %vm762_vm14 = vcmp.eq.s32.totalorder %v3012_v5, 0  ;;  %v934_v51 = vadd.s32 536870912, %v933_v26  ;;  %v984_v59 = vor.u32 8388608, %v983_v17  ;;  %v1005_v22 = vshll.u32 %v3513_v30, %v990_v35 }
  0xeb   :  { %v1006_v61 = vshrl.u32 %v3523_v10, %v991_v2  ;;  %v853_v7 = vmul.f32 %v852_v18, %v850_v14  ;;  %v995_v15 = vor.u32 %v994_v19, %v993_v32  ;;  %v998_v27 = vor.u32 %v997_v12, %v996_v23 }
  0xec   :  { %v1004_v41 = vor.u32 %v1003_v33, %v1002_v37  ;;  %v3539_v4 = vxor.u32 2147483648, %v3004_v50  ;;  %v3540_v16 = vxor.u32 2147483648, %v2982_v31  ;;  %v3060_v6 = vshrl.u32 %v934_v51, 30  ;;  %v3067_v32 = vpop.eup %2281 }
  0xed   :  { %vm1008_vm15 = vcmp.lt.s32.totalorder %v3040_v52, 1  ;;  %v854_v14 = vxor.u32 2147483648, %v853_v7  ;;  %v857_v12 = vsel %vm772_vm9, %v856_v48, %v2957_v3  ;;  %v1001_v35 = vor.u32 %v1000_v53, %v999_v20  ;;  %v3073_v18 = vpop.eup %2283 }
  0xee   :  { %v661_v25 = vsel %vm659_vm6, %v2982_v31, %v3539_v4  ;;  %v664_v17 = vsel %vm662_vm7, %v3540_v16, %v3004_v50  ;;  %vm1011_vm0 = vcmp.lt.s32.totalorder %v3040_v52, 4  ;;  %v936_v23 = vshll.u32 %v3060_v6, 30 }
  0xef   :  { %v1007_v37 = vor.u32 %v1006_v61, %v1005_v22  ;;  %vm1010_vm1 = vcmp.lt.s32.totalorder %v3040_v52, 3  ;;  %v3071_v16 = vshll.u32 %v984_v59, 8  ;;  %vm553_vm2 = vweird.f32 %v2425_v8 }
  0xf0   :  { %vm761_vm3 = vcmp.lt.s32.totalorder %v3012_v5, 2  ;;  %v855_v3 = vsel %vm772_vm9, %v854_v14, %v853_v7  ;;  %vm1009_vm4 = vcmp.lt.s32.totalorder %v3040_v52, 2  ;;  %v1016_v53 = vsel %vm1008_vm15, %v995_v15, %v998_v27 }
  0xf1   :  { %v1017_v19 = vsel %vm1011_vm0, %v1004_v41, 920167782  ;;  %vm656_vm5 = vweird.f32 %v2430_v39  ;;  %v665_v48 = vsel %vm658_vm10, %v661_v25, %v664_v17  ;;  %v3089_v20 = vsel %vm3033_vm12, 0, %v857_v12 }
  0xf2   :  { %v3091_v33 = vsub.s32 %v933_v26, %v936_v23  ;;  %v3541_v51 = vmov 683565275   ;;  %v3510_v22 = vxor.u32 2147483648, %v3067_v32  ;;  %v1013_v61 = vsel %vm1011_vm0, %v1001_v35, 2102212464 }
  0xf3   :  { %v992_v59 = vshrl.u32 %v3541_v51, %v991_v2  ;;  %v1018_v7 = vsel %vm1010_vm1, %v1001_v35, %v1017_v19  ;;  %v3511_v4 = vand.u32 2147483647, %v2452_v1  ;;  %v3512_v25 = vxor.u32 2147483648, %v3073_v18 }
  0xf4   :  { %v858_v58 = vsel %vm3033_vm12, %v2444_v60, %v855_v3  ;;  %vm875_vm6 = vcmp.lt.s32.totalorder %v2446_v62, 0  ;;  %v939_v2 = vsub.s32 0, %v3091_v33  ;;  %v1019_v26 = vsel %vm1009_vm4, %v1016_v53, %v1018_v7 }
  0xf5   :  { %v1020_v17 = vsel %vm1008_vm15, %v998_v27, %v1001_v35  ;;  %v1021_v14 = vsel %vm1011_vm0, %v1007_v37, 1326507024  ;;  %v3113_v12 = vmul.u32.u64.low %v3071_v16, %v1019_v26  ;;  %v3114_v23 = vmul.u32.u64.high %v3071_v16, %v1019_v26, %v3113_v12 }
  0xf6   :  { %vm759_vm7 = vweird.f32 %v2437_v55  ;;  %v767_v34 = vsel %vm765_vm13, %v3510_v22, %v3073_v18  ;;  %v2154_v3 = vmin.u32 %v939_v2, %v3091_v33  ;;  %v1012_v35 = vsel %vm1008_vm15, %v992_v59, %v995_v15  ;;  %v3567_v55 = vld [vmem:[#allocation12_spill] sm:$0xff] }
  0xf7   :  { %v1014_v37 = vsel %vm1010_vm1, %v998_v27, %v1013_v61  ;;  %v764_v53 = vsel %vm762_vm14, %v3067_v32, %v3512_v25  ;;  %2285 = vcosq.f32 %v858_v58  ;;  %v1022_v19 = vsel %vm1010_vm1, %v1004_v41, %v1021_v14 }
  0xf8   :  { %v1082_v7 = vand.u32 2139095040, %v2452_v1  ;;  %2287 = vsinq.f32 %v858_v58  ;;  %v941_v2 = vclz %v2154_v3  ;;  %v959_v26 = vsub.s32 4, %v3060_v6 }
  0xf9   :  { %v1023_v15 = vsel %vm1009_vm4, %v1020_v17, %v1022_v19  ;;  %v1015_v27 = vsel %vm1009_vm4, %v1012_v35, %v1014_v37  ;;  %v563_v41 = vsel %vm553_vm2, nan, %v2952_v47  ;;  %v3149_v58 = vand.u32 3, %v3089_v20 }
  0xfa   :  { %v3142_v59 = vmul.u32.u64.low %v3071_v16, %v1023_v15  ;;  %v3143_v61 = vmul.u32.u64.high %v3071_v16, %v1023_v15, %v3142_v59  ;;  %v1083_v22 = vshrl.u32 %v1082_v7, 23  ;;  %v3542_v14 = vand.u32 2147483647, %v2446_v62 }
  0xfb   :  { %v2155_v52 = vadd.s32 4294967294, %v941_v2  ;;  %v666_v17 = vsel %vm656_vm5, nan, %v665_v48  ;;  %v1034_v35 = vadd.s32 1, %v3114_v23  ;;  %v1086_v19 = vand.u32 8388607, %v3511_v4 }
  0xfc   :  { %vm3153_vm9 = vcmp.le.f32.partialorder %v3542_v14, 0.7853982  ;;  %v2161_v37 = vadd.s32 4294967169, %v1083_v22  ;;  %v768_v47 = vsel %vm761_vm3, %v764_v53, %v767_v34  ;;  %v929_v7 = vadd.s32 %v3000_v29, %v3016_v21 }
  0xfd   :  { %vm2156_vm10 = vcmp.lt.s32.totalorder %v2155_v52, 0  ;;  %v1031_v15 = vmul.u32 %v3071_v16, %v1015_v27  ;;  %v960_v48 = vsel %vm875_vm6, %v959_v26, %v3060_v6  ;;  %vm1033_vm11 = vc.u32 %v3143_v61, %v3113_v12 }
  0xfe   :  { %v944_v59 = vsel %vm2156_vm10, 0, %v2155_v52  ;;  %v1089_v22 = vadd.s32 1, %v2161_v37  ;;  %vm865_vm12 = vcmp.eq.s32.totalorder %v3149_v58, 0  ;;  %vm868_vm13 = vcmp.eq.s32.totalorder %v3149_v58, 2 }
  0xff   :  { %v945_v5 = vsub.s32 32, %v944_v59  ;;  %v946_v34 = vshll.u32 %v3091_v33, %v944_v59  ;;  %v949_v29 = vsub.s32 4294967266, %v944_v59  ;;  %v3177_v21 = vsel %vm759_vm7, nan, %v768_v47 }
 0x100   :  { %v1035_v16 = vsel %vm1033_vm11, %v1034_v35, %v3114_v23  ;;  %v1087_v53 = vor.u32 8388608, %v1086_v19  ;;  %vm1090_vm14 = vcmp.gt.s32.totalorder %v1089_v22, 0  ;;  %v3182_v26 = vsel %vm3153_vm9, 0, %v960_v48 }
 0x101   :  { %v947_v6 = vshrl.u32 %v929_v7, %v945_v5  ;;  %v950_v2 = vadd.s32 127, %v949_v29  ;;  %v1036_v27 = vadd.s32 %v1035_v16, %v1031_v15  ;;  %v3184_v14 = vpop.eup %2285  ;;  %v3187_v33 = vand.u32 3, %v3182_v26 }
 0x102   :  { %v1091_v52 = vsel %vm1090_vm14, %v1089_v22, 0  ;;  %v3191_v37 = vmul.f32 %v2945_v24, %v2668_v13  ;;  %v1283_v23 = vadd.s32 3, %v2746_v45  ;;  %v3194_v35 = vpop.eup %2287  ;;  %vm864_vm15 = vcmp.lt.s32.totalorder %v3149_v58, 2 }
 0x103   :  { %v948_v19 = vor.u32 %v947_v6, %v946_v34  ;;  %v951_v47 = vshll.u32 %v950_v2, 23  ;;  %v1037_v7 = vadd.s32 536870912, %v1036_v27  ;;  %v3198_v15 = vmul.f32 %v563_v41, %v2680_v54 }
 0x104   :  { %3545 = vst [vmem:[#allocation15_spill] sm:$0xff] %v3191_v37  ;;  %v1093_v59 = vand.u32 31, %v1091_v52  ;;  %v3200_v48 = vshll.u32 %v1087_v53, 8  ;;  %v3203_v22 = vmul.f32 %v666_v17, %v2725_v38  ;;  %v3206_v24 = vadd.s32 3, %v2816_v36 }
 0x105   :  { %3546 = vst [vmem:[#allocation16_spill] sm:$0xff] %v3198_v15  ;;  %v952_v5 = vor.u32 4788187, %v951_v47  ;;  %v955_v29 = vcvt.s32.f32 %v948_v19  ;;  %v3209_v16 = vshrl.u32 %v1037_v7, 30  ;;  %v3212_v6 = vshrl.u32 %v1091_v52, 5 }
 0x106   :  { %3547 = vst [vmem:[#allocation17_spill] sm:$0xff] %v3203_v22  ;;  %v1094_v41 = vsub.s32 32, %v1093_v59  ;;  %v3214_v2 = vand.u32 3, %v1283_v23  ;;  %v1096_v4 = vshll.u32 %v3541_v51, %v1093_v59  ;;  %v1099_v36 = vshll.u32 %v3534_v9, %v1093_v59 }
 0x107   :  { %v953_v53 = vand.u32 2147483647, %v952_v5  ;;  %v1039_v17 = vshll.u32 %v3209_v16, 30  ;;  %v1102_v47 = vshll.u32 %v3538_v43, %v1093_v59  ;;  %v3548_v7 = vmov 2102212464  }
 0x108   :  { %v1097_v25 = vshrl.u32 %v3534_v9, %v1094_v41  ;;  %v1100_v19 = vshrl.u32 %v3538_v43, %v1094_v41  ;;  %v1105_v45 = vshll.u32 %v3548_v7, %v1093_v59  ;;  %v1103_v23 = vshrl.u32 %v3548_v7, %v1094_v41 }
 0x109   :  { %v956_v52 = vmul.f32 %v955_v29, %v953_v53  ;;  %v3223_v34 = vsub.s32 %v1036_v27, %v1039_v17  ;;  %v1106_v5 = vshrl.u32 %v3513_v30, %v1094_v41  ;;  %v3549_v22 = vxor.u32 2147483648, %v3194_v35 }
 0x10a   :  { %v3550_v9 = vxor.u32 2147483648, %v3184_v14  ;;  %v1032_v27 = vadd.s32 %v3113_v12, %v3143_v61  ;;  %vm1286_vm0 = vcmp.eq.s32.totalorder %v3214_v2, 0  ;;  %v1095_v17 = vshrl.u32 %v3541_v51, %v1094_v41 }
 0x10b   :  { %v867_v15 = vsel %vm865_vm12, %v3184_v14, %v3549_v22  ;;  %v957_v29 = vxor.u32 2147483648, %v956_v52  ;;  %v1042_v53 = vsub.s32 0, %v3223_v34  ;;  %v1098_v7 = vor.u32 %v1097_v25, %v1096_v4 }
 0x10c   :  { %v870_v43 = vsel %vm868_vm13, %v3550_v9, %v3194_v35  ;;  %v1101_v30 = vor.u32 %v1100_v19, %v1099_v36  ;;  %v1107_v37 = vor.u32 %v1106_v5, %v1105_v45  ;;  %v3551_v22 = vmov 920167782  }
 0x10d   :  { %v1108_v38 = vshll.u32 %v3551_v22, %v1093_v59  ;;  %v1109_v54 = vshrl.u32 %v3523_v10, %v1094_v41  ;;  %v958_v9 = vsel %vm875_vm6, %v957_v29, %v956_v52  ;;  %v2158_v13 = vmin.u32 %v1042_v53, %v3223_v34 }
 0x10e   :  { %v1104_v12 = vor.u32 %v1103_v23, %v1102_v47  ;;  %vm1111_vm1 = vcmp.lt.s32.totalorder %v3212_v6, 1  ;;  %v871_v61 = vsel %vm864_vm15, %v867_v15, %v870_v43  ;;  %v961_v51 = vsel %vm3153_vm9, %v2446_v62, %v958_v9 }
 0x10f   :  { %v1110_v4 = vor.u32 %v1109_v54, %v1108_v38  ;;  %vm1113_vm3 = vcmp.lt.s32.totalorder %v3212_v6, 3  ;;  %vm1285_vm4 = vcmp.lt.s32.totalorder %v3214_v2, 2  ;;  %vm862_vm10 = vweird.f32 %v2444_v60 }
 0x110   :  { %2289 = vcosq.f32 %v961_v51  ;;  %v1044_v10 = vclz %v2158_v13  ;;  %vm1112_vm6 = vcmp.lt.s32.totalorder %v3212_v6, 2  ;;  %vm1114_vm11 = vcmp.lt.s32.totalorder %v3212_v6, 4 }
 0x111   :  { %2291 = vsinq.f32 %v961_v51  ;;  %vm978_vm12 = vcmp.lt.s32.totalorder %v2448_v63, 0  ;;  %v1116_v25 = vsel %vm1114_vm11, %v1104_v12, 2102212464  ;;  %v1119_v58 = vsel %vm1111_vm1, %v1098_v7, %v1101_v30 }
 0x112   :  { %v1120_v54 = vsel %vm1114_vm11, %v1107_v37, 920167782  ;;  %v2159_v38 = vadd.s32 4294967294, %v1044_v10  ;;  %v1115_v3 = vsel %vm1111_vm1, %v1095_v17, %v1098_v7  ;;  %v1123_v13 = vsel %vm1111_vm1, %v1101_v30, %v1104_v12 }
 0x113   :  { %v1121_v15 = vsel %vm1113_vm3, %v1104_v12, %v1120_v54  ;;  %v1117_v59 = vsel %vm1113_vm3, %v1101_v30, %v1116_v25  ;;  %v1124_v41 = vsel %vm1114_vm11, %v1110_v4, 1326507024  ;;  %vm1289_vm9 = vcmp.eq.s32.totalorder %v3214_v2, 2 }
 0x114   :  { %v1122_v45 = vsel %vm1112_vm6, %v1119_v58, %v1121_v15  ;;  %vm2160_vm13 = vcmp.lt.s32.totalorder %v2159_v38, 0  ;;  %v1125_v36 = vsel %vm1113_vm3, %v1107_v37, %v1124_v41  ;;  %vm968_vm14 = vcmp.eq.s32.totalorder %v3187_v33, 0 }
 0x115   :  { %v3275_v19 = vmul.u32.u64.low %v3200_v48, %v1122_v45  ;;  %v3276_v47 = vmul.u32.u64.high %v3200_v48, %v1122_v45, %v3275_v19  ;;  %vm971_vm15 = vcmp.eq.s32.totalorder %v3187_v33, 2  ;;  %v3552_v30 = vand.u32 2147483647, %v2448_v63 }
 0x116   :  { %v1047_v23 = vsel %vm2160_vm13, 0, %v2159_v38  ;;  %v1062_v5 = vsub.s32 4, %v3209_v16  ;;  %v1126_v37 = vsel %vm1112_vm6, %v1123_v13, %v1125_v36  ;;  %v3555_v43 = vxor.u32 2147483648, %v2847_v56 }
 0x117   :  { %vm3282_vm1 = vcmp.le.f32.partialorder %v3552_v30, 0.7853982  ;;  %v1048_v53 = vsub.s32 32, %v1047_v23  ;;  %v1049_v17 = vshll.u32 %v3223_v34, %v1047_v23  ;;  %v1052_v7 = vsub.s32 4294967266, %v1047_v23 }
 0x118   :  { %v1288_v29 = vsel %vm1286_vm0, %v2833_v28, %v3555_v43  ;;  %v1118_v22 = vsel %vm1112_vm6, %v1115_v3, %v1117_v59  ;;  %v3298_v9 = vmul.u32.u64.low %v3200_v48, %v1126_v37  ;;  %v3299_v12 = vmul.u32.u64.high %v3200_v48, %v1126_v37, %v3298_v9 }
 0x119   :  { %v3556_v51 = vxor.u32 2147483648, %v2833_v28  ;;  %v1388_v10 = vand.u32 3, %v3206_v24  ;;  %vm967_vm0 = vcmp.lt.s32.totalorder %v3187_v33, 2  ;;  %v1050_v25 = vshrl.u32 %v1032_v27, %v1048_v53 }
 0x11a   :  { %v1053_v34 = vadd.s32 127, %v1052_v7  ;;  %v1137_v58 = vadd.s32 1, %v3276_v47  ;;  %v1491_v6 = vadd.s32 3, %v2907_v49  ;;  %v872_v54 = vsel %vm862_vm10, nan, %v871_v61  ;;  %v3313_v28 = vpop.eup %2289 }
 0x11b   :  { %v1291_v4 = vsel %vm1289_vm9, %v3556_v51, %v2847_v56  ;;  %v1134_v38 = vmul.u32 %v3200_v48, %v1118_v22  ;;  %vm1390_vm3 = vcmp.eq.s32.totalorder %v1388_v10, 0  ;;  %vm1393_vm6 = vcmp.eq.s32.totalorder %v1388_v10, 2  ;;  %v3320_v15 = vpop.eup %2291 }
 0x11c   :  { %v1051_v56 = vor.u32 %v1050_v25, %v1049_v17  ;;  %v1054_v3 = vshll.u32 %v1053_v34, 23  ;;  %v1063_v24 = vsel %vm978_vm12, %v1062_v5, %v3209_v16  ;;  %v1292_v27 = vsel %vm1285_vm4, %v1288_v29, %v1291_v4 }
 0x11d   :  { %vm1136_vm11 = vc.u32 %v3299_v12, %v3275_v19  ;;  %vm1389_vm9 = vcmp.lt.s32.totalorder %v1388_v10, 2  ;;  %v3557_v49 = vxor.u32 2147483648, %v2875_v42  ;;  %v1595_v61 = vadd.s32 3, %v2973_v0 }
 0x11e   :  { %v1055_v13 = vor.u32 4788187, %v1054_v3  ;;  %v1058_v59 = vcvt.s32.f32 %v1051_v56  ;;  %v1138_v45 = vsel %vm1136_vm11, %v1137_v58, %v3276_v47  ;;  %v3558_v16 = vxor.u32 2147483648, %v2863_v46 }
 0x11f   :  { %v1392_v48 = vsel %vm1390_vm3, %v2863_v46, %v3557_v49  ;;  %v1139_v41 = vadd.s32 %v1138_v45, %v1134_v38  ;;  %v3333_v36 = vmul.f32 %v3177_v21, %v2727_v11  ;;  %v3336_v30 = vmul.f32 %v872_v54, %v2735_v44 }
 0x120   :  { %v1395_v2 = vsel %vm1393_vm6, %v3558_v16, %v2875_v42  ;;  %v1492_v23 = vand.u32 3, %v1491_v6  ;;  %vm965_vm4 = vweird.f32 %v2446_v62  ;;  %v969_v0 = vxor.u32 2147483648, %v3320_v15 }
 0x121   :  { %v972_v5 = vxor.u32 2147483648, %v3313_v28  ;;  %v1056_v47 = vand.u32 2147483647, %v1055_v13  ;;  %v1065_v46 = vsel %vm3282_vm1, 0, %v1063_v24  ;;  %v1140_v37 = vadd.s32 536870912, %v1139_v41 }
 0x122   :  { %v3343_v42 = vand.u32 3, %v1065_v46  ;;  %v3347_v21 = vsel %vm450_vm8, nan, %v1292_v27  ;;  %v1396_v43 = vsel %vm1389_vm9, %v1392_v48, %v1395_v2  ;;  %v970_v29 = vsel %vm968_vm14, %v3313_v28, %v969_v0 }
 0x123   :  { %v973_v53 = vsel %vm971_vm15, %v972_v5, %v3320_v15  ;;  %v1059_v17 = vmul.f32 %v1058_v59, %v1056_v47  ;;  %v1596_v7 = vand.u32 3, %v1595_v61  ;;  %v3357_v22 = vadd.s32 %v3275_v19, %v3299_v12 }
 0x124   :  { %v1141_v9 = vshrl.u32 %v1140_v37, 30  ;;  %vm1494_vm13 = vcmp.eq.s32.totalorder %v1492_v23, 0  ;;  %v1699_v40 = vadd.s32 3, %v3089_v20  ;;  %v1397_v4 = vsel %vm553_vm2, nan, %v1396_v43 }
 0x125   :  { %v1060_v51 = vxor.u32 2147483648, %v1059_v17  ;;  %vm1493_vm8 = vcmp.lt.s32.totalorder %v1492_v23, 2  ;;  %vm1497_vm3 = vcmp.eq.s32.totalorder %v1492_v23, 2  ;;  %v974_v10 = vsel %vm967_vm0, %v970_v29, %v973_v53 }
 0x126   :  { %v1142_v25 = vshll.u32 %v1141_v9, 30  ;;  %vm1598_vm14 = vcmp.eq.s32.totalorder %v1596_v7, 0  ;;  %vm1601_vm15 = vcmp.eq.s32.totalorder %v1596_v7, 2  ;;  %v3559_v12 = vxor.u32 2147483648, %v3004_v50 }
 0x127   :  { %v1061_v19 = vsel %vm978_vm12, %v1060_v51, %v1059_v17  ;;  %v1700_v20 = vand.u32 3, %v1699_v40  ;;  %v1803_v58 = vadd.s32 3, %v3182_v26  ;;  %vm1081_vm2 = vcmp.lt.s32.totalorder %v2452_v1, 0 }
 0x128   :  { %v1496_v34 = vsel %vm1494_vm13, %v2982_v31, %v3559_v12  ;;  %v1064_v8 = vsel %vm3282_vm1, %v2448_v63, %v1061_v19  ;;  %v3374_v33 = vsub.s32 %v1139_v41, %v1142_v25  ;;  %v3560_v6 = vxor.u32 2147483648, %v2982_v31  ;;  %v3568_v19 = vld [vmem:[#allocation15_spill] sm:$0xff] }
 0x129   :  { %vm1597_vm12 = vcmp.lt.s32.totalorder %v1596_v7, 2  ;;  %2293 = vcosq.f32 %v1064_v8  ;;  %v3561_v38 = vxor.u32 2147483648, %v3073_v18  ;;  %v3562_v26 = vxor.u32 2147483648, %v3067_v32 }
 0x12a   :  { %v1499_v54 = vsel %vm1497_vm3, %v3560_v6, %v3004_v50  ;;  %vm1702_vm0 = vcmp.eq.s32.totalorder %v1700_v20, 0  ;;  %v975_v52 = vsel %vm965_vm4, nan, %v974_v10  ;;  %2295 = vsinq.f32 %v1064_v8 }
 0x12b   :  { %v1600_v56 = vsel %vm1598_vm14, %v3067_v32, %v3561_v38  ;;  %v1603_v3 = vsel %vm1601_vm15, %v3562_v26, %v3073_v18  ;;  %v1145_v24 = vsub.s32 0, %v3374_v33  ;;  %vm1701_vm1 = vcmp.lt.s32.totalorder %v1700_v20, 2  ;;  %v2032_v26 = vld [vmem:[#allocation3 + $0x10] sm:$0xf] }
 0x12c   :  { %vm1074_vm6 = vcmp.eq.s32.totalorder %v3343_v42, 2  ;;  %v3563_v31 = vxor.u32 2147483648, %v3194_v35  ;;  %vm1705_vm11 = vcmp.eq.s32.totalorder %v1700_v20, 2  ;;  %v1804_v27 = vand.u32 3, %v1803_v58  ;;  %v3570_v58 = vld [vmem:[#allocation17_spill] sm:$0xff] }
 0x12d   :  { %v1907_v49 = vadd.s32 3, %v1065_v46  ;;  %vm1071_vm9 = vcmp.eq.s32.totalorder %v3343_v42, 0  ;;  %v2162_v32 = vmin.u32 %v1145_v24, %v3374_v33  ;;  %v1165_v18 = vsub.s32 4, %v1141_v9 }
 0x12e   :  { %v1704_v50 = vsel %vm1702_vm0, %v3184_v14, %v3563_v31  ;;  %v1500_v48 = vsel %vm1493_vm8, %v1496_v34, %v1499_v54  ;;  %v1604_v61 = vsel %vm1597_vm12, %v1600_v56, %v1603_v3  ;;  %vm1070_vm13 = vcmp.lt.s32.totalorder %v3343_v42, 2  ;;  %v3569_v34 = vld [vmem:[#allocation16_spill] sm:$0xff]  ;;  %v2030_v54 = vld [vmem:[#allocation3] sm:$0xf]  ;;  %v2031_v56 = vld [vmem:[#allocation3 + $0x8] sm:$0xf] }
 0x12f   :  { %v3564_v13 = vxor.u32 2147483648, %v3184_v14  ;;  %vm1805_vm3 = vcmp.lt.s32.totalorder %v1804_v27, 2  ;;  %vm1806_vm14 = vcmp.eq.s32.totalorder %v1804_v27, 0  ;;  %vm1809_vm15 = vcmp.eq.s32.totalorder %v1804_v27, 2  ;;  %v2035_v42 = vld [vmem:[#allocation3 + $0x28] sm:$0xf] }
 0x130   :  { %vm1068_vm0 = vweird.f32 %v2448_v63  ;;  %v1147_v45 = vclz %v2162_v32  ;;  %v1808_v2 = vsel %vm1806_vm14, %v3313_v28, %v969_v0  ;;  %v1811_v41 = vsel %vm1809_vm15, %v972_v5, %v3320_v15  ;;  %v3565_v15 = vld [vmem:[#allocation10_spill] sm:$0xff]  ;;  %v3566_v0 = vld [vmem:[#allocation11_spill] sm:$0xff]  ;;  %v2033_v32 = vld [vmem:[#allocation3 + $0x18] sm:$0xf] }
 0x131   :  { %v1707_v59 = vsel %vm1705_vm11, %v3564_v13, %v3194_v35  ;;  %v1187_v23 = vmul.f32 %v975_v52, %v2803_v57  ;;  %v1501_v47 = vsel %vm656_vm5, nan, %v1500_v48  ;;  %v1812_v46 = vsel %vm1805_vm3, %v1808_v2, %v1811_v41  ;;  %v2036_v41 = vld [vmem:[#allocation3 + $0x30] sm:$0xf]  ;;  %v2040_v63 = vld [vmem:[#allocation3 + $0x10] sm:$0xf0] }
 0x132   :  { %v1708_v16 = vsel %vm1701_vm1, %v1704_v50, %v1707_v59  ;;  %v1908_v14 = vand.u32 3, %v1907_v49  ;;  %v2163_v35 = vadd.s32 4294967294, %v1147_v45  ;;  %v1605_v37 = vsel %vm759_vm7, nan, %v1604_v61  ;;  %v3574_v45 = vld [vmem:[#allocation14_spill] sm:$0xff] }
 0x133   :  { %v1709_v43 = vsel %vm862_vm10, nan, %v1708_v16  ;;  %v1813_v29 = vsel %vm965_vm4, nan, %v1812_v46  ;;  %v3415_v28 = vsel %vm1081_vm2, %v1165_v18, %v1141_v9  ;;  %v2022_v39 = vmul.f32 %v3347_v21, %v3565_v15  ;;  %v2294_v53 = vpop.eup %2293  ;;  %v2034_v18 = vld [vmem:[#allocation3 + $0x20] sm:$0xf] }
 0x134   :  { %vm1909_vm8 = vcmp.lt.s32.totalorder %v1908_v14, 2  ;;  %v3420_v5 = vmul.f32 %v1397_v4, %v3566_v0  ;;  %vm2164_vm5 = vcmp.lt.s32.totalorder %v2163_v35, 0  ;;  %vm1910_vm12 = vcmp.eq.s32.totalorder %v1908_v14, 0  ;;  %v2296_v40 = vpop.eup %2295 }
 0x135   :  { %vm1913_vm7 = vcmp.eq.s32.totalorder %v1908_v14, 2  ;;  %v2024_v60 = vmul.f32 %v1501_v47, %v3567_v55  ;;  %v1150_v17 = vsel %vm2164_vm5, 0, %v2163_v35  ;;  %v2025_v62 = vmul.f32 %v1605_v37, %v2727_v11  ;;  %v2041_v55 = vld [vmem:[#allocation3 + $0x18] sm:$0xf0] }
 0x136   :  { %v2026_v7 = vmul.f32 %v1709_v43, %v2735_v44  ;;  %v3426_v9 = vmul.f32 %v1813_v29, %v2803_v57  ;;  %v1075_v51 = vxor.u32 2147483648, %v2294_v53  ;;  %v1151_v21 = vsub.s32 32, %v1150_v17  ;;  %v2038_v43 = vld [vmem:[#allocation3] sm:$0xf0]  ;;  %v2039_v29 = vld [vmem:[#allocation3 + $0x8] sm:$0xf0] }
 0x137   :  { %v1152_v4 = vshll.u32 %v3374_v33, %v1150_v17  ;;  %v1155_v10 = vsub.s32 4294967266, %v1150_v17  ;;  %v1072_v25 = vxor.u32 2147483648, %v2296_v40  ;;  %v2046_v12 = vadd.f32 1.0, %v3568_v19 }
 0x138   :  { %v2047_v20 = vadd.f32 1.0, %v3569_v34  ;;  %v2048_v8 = vadd.f32 1.0, %v3570_v58  ;;  %v1076_v11 = vsel %vm1074_vm6, %v1075_v51, %v2296_v40  ;;  %v1153_v44 = vshrl.u32 %v3357_v22, %v1151_v21  ;;  %v2044_v34 = vld [vmem:[#allocation3 + $0x30] sm:$0xf0] }
 0x139   :  { %v1156_v57 = vadd.s32 127, %v1155_v10  ;;  %v1915_v6 = vsel %vm1913_vm7, %v1075_v51, %v2296_v40  ;;  %v1073_v33 = vsel %vm1071_vm9, %v2294_v53, %v1072_v25  ;;  %v1912_v38 = vsel %vm1910_vm12, %v2294_v53, %v1072_v25  ;;  %v2043_v10 = vld [vmem:[#allocation3 + $0x28] sm:$0xf0] }
 0x13a   :  { %v2049_v3 = vadd.f32 1.0, %v3333_v36  ;;  %v2050_v52 = vadd.f32 1.0, %v3336_v30  ;;  %v1077_v24 = vsel %vm1070_vm13, %v1073_v33, %v1076_v11  ;;  %v3571_v22 = vand.u32 2147483647, %v2452_v1 }
 0x13b   :  { %v1154_v50 = vor.u32 %v1153_v44, %v1152_v4  ;;  %v1157_v27 = vshll.u32 %v1156_v57, 23  ;;  %v1916_v49 = vsel %vm1909_vm8, %v1912_v38, %v1915_v6  ;;  %v1078_v36 = vsel %vm1068_vm0, nan, %v1077_v24  ;;  %v2042_v4 = vld [vmem:[#allocation3 + $0x20] sm:$0xf0] }
 0x13c   :  { %vm3445_vm10 = vcmp.le.f32.partialorder %v3571_v22, 0.7853982  ;;  %v1917_v30 = vsel %vm1068_vm0, nan, %v1916_v49  ;;  %v2051_v48 = vadd.f32 1.0, %v1187_v23  ;;  %v2054_v61 = vmul.f32 %v2046_v12, %v2030_v54  ;;  %v3576_v24 = vld [vmem:[#allocation13_spill] sm:$0xff] }
 0x13d   :  { %v1158_v13 = vor.u32 4788187, %v1157_v27  ;;  %v1161_v59 = vcvt.s32.f32 %v1154_v50  ;;  %v1188_v16 = vmul.f32 %v1078_v36, %v3574_v45  ;;  %v2028_v2 = vmul.f32 %v1917_v30, %v3574_v45 }
 0x13e   :  { %v2055_v47 = vmul.f32 %v2047_v20, %v2031_v56  ;;  %v2056_v46 = vmul.f32 %v2048_v8, %v2032_v26  ;;  %v2057_v14 = vmul.f32 %v2049_v3, %v2033_v32  ;;  %v2058_v35 = vmul.f32 %v2050_v52, %v2034_v18  ;;  %2062 = vst [vmem:[#allocation6] sm:$0xf] %v2054_v61  ;;  %v3575_v52 = vld [vmem:[#allocation9_spill] sm:$0xff] }
 0x13f   :  { %v1159_v37 = vand.u32 2147483647, %v1158_v13  ;;  %v2052_v15 = vadd.f32 1.0, %v1188_v16  ;;  %v2059_v0 = vmul.f32 %v2051_v48, %v2035_v42  ;;  %v2070_v23 = vadd.f32 1.0, %v2022_v39 }
 0x140   :  { %2063 = vst [vmem:[#allocation6 + $0x8] sm:$0xf] %v2055_v47  ;;  %2064 = vst [vmem:[#allocation6 + $0x10] sm:$0xf] %v2056_v46  ;;  %v2071_v53 = vadd.f32 1.0, %v3420_v5  ;;  %v2072_v17 = vadd.f32 1.0, %v2024_v60  ;;  %v336_v22 = vmul.f32 %v3576_v24, %v3575_v52  ;;  %vm1171_vm14 = vweird.f32 %v2452_v1 }
 0x141   :  { %2065 = vst [vmem:[#allocation6 + $0x18] sm:$0xf] %v2057_v14  ;;  %2066 = vst [vmem:[#allocation6 + $0x20] sm:$0xf] %v2058_v35  ;;  %v2073_v40 = vadd.f32 1.0, %v2025_v62  ;;  %v2074_v51 = vadd.f32 1.0, %v2026_v7  ;;  %v1162_v21 = vmul.f32 %v1161_v59, %v1159_v37  ;;  %v2060_v25 = vmul.f32 %v2052_v15, %v2036_v41 }
 0x142   :  { %2067 = vst [vmem:[#allocation6 + $0x28] sm:$0xf] %v2059_v0  ;;  %v2075_v19 = vadd.f32 1.0, %v3426_v9  ;;  %v2076_v12 = vadd.f32 1.0, %v2028_v2  ;;  %v2086_v39 = vrot.slane %v2070_v23, 4  ;;  %v2087_v20 = vrot.slane %v2071_v53, 4 }
 0x143   :  { %v2088_v58 = vrot.slane %v2072_v17, 4  ;;  %v2089_v8 = vrot.slane %v2073_v40, 4  ;;  %v1163_v11 = vxor.u32 2147483648, %v1162_v21  ;;  %2068 = vst [vmem:[#allocation6 + $0x30] sm:$0xf] %v2060_v25  ;;  %v2090_v44 = vrot.slane %v2074_v51, 4 }
 0x144   :  { %v2091_v5 = vrot.slane %v2075_v19, 4  ;;  %v2092_v60 = vrot.slane %v2076_v12, 4  ;;  %v2102_v62 = vmul.f32 %v2086_v39, %v2038_v43  ;;  %v2103_v7 = vmul.f32 %v2087_v20, %v2039_v29  ;;  %v2037_v14 = vld [vmem:[#allocation3 + $0x38] sm:$0xf]  ;;  %v2045_v43 = vld [vmem:[#allocation3 + $0x38] sm:$0xf0] }
 0x145   :  { %v2104_v57 = vmul.f32 %v2088_v58, %v2040_v63  ;;  %v2105_v6 = vmul.f32 %v2089_v8, %v2041_v55  ;;  %v1164_v54 = vsel %vm1081_vm2, %v1163_v11, %v1162_v21  ;;  %v2106_v33 = vmul.f32 %v2090_v44, %v2042_v4 }
 0x146   :  { %v2107_v9 = vmul.f32 %v2091_v5, %v2043_v10  ;;  %v2108_v38 = vmul.f32 %v2092_v60, %v2044_v34  ;;  %v1167_v56 = vsel %vm3445_vm10, %v2452_v1, %v1164_v54  ;;  %v1168_v26 = vsel %vm3445_vm10, 0, %v3415_v28  ;;  %2110 = vst [vmem:[#allocation6] sm:$0xf0] %v2102_v62  ;;  %2111 = vst [vmem:[#allocation6 + $0x8] sm:$0xf0] %v2103_v7 }
 0x147   :  { %2112 = vst [vmem:[#allocation6 + $0x10] sm:$0xf0] %v2104_v57  ;;  %2113 = vst [vmem:[#allocation6 + $0x18] sm:$0xf0] %v2105_v6  ;;  %2297 = vcosq.f32 %v1167_v56  ;;  %v2011_v3 = vadd.s32 3, %v1168_v26  ;;  %vm337_vm4 = vcmp.eq.f32.partialorder %v3575_v52, inf }
 0x148   :  { %2114 = vst [vmem:[#allocation6 + $0x20] sm:$0xf0] %v2106_v33  ;;  %2115 = vst [vmem:[#allocation6 + $0x28] sm:$0xf0] %v2107_v9  ;;  %2299 = vsinq.f32 %v1167_v56  ;;  %v340_v50 = vand.u32 2147483648, %v3575_v52  ;;  %v1172_v27 = vand.u32 3, %v1168_v26  ;;  %v338_v28 = vsel %vm337_vm4, %v3575_v52, %v336_v22 }
 0x149   :  { %2116 = vst [vmem:[#allocation6 + $0x30] sm:$0xf0] %v2108_v38  ;;  %v2012_v31 = vand.u32 3, %v2011_v3  ;;  %vm339_vm2 = vcmp.eq.f32.partialorder %v3575_v52, 0.0 }
 0x14a   :  { %v341_v32 = vsel %vm339_vm2, %v340_v50, %v338_v28  ;;  %vm1177_vm1 = vcmp.eq.s32.totalorder %v1172_v27, 2  ;;  %vm1174_vm11 = vcmp.eq.s32.totalorder %v1172_v27, 0  ;;  %vm1173_vm13 = vcmp.lt.s32.totalorder %v1172_v27, 2 }
 0x14b   :  { %vm2017_vm6 = vcmp.eq.s32.totalorder %v2012_v31, 2  ;;  %vm2014_vm9 = vcmp.eq.s32.totalorder %v2012_v31, 0  ;;  %vm2013_vm3 = vcmp.lt.s32.totalorder %v2012_v31, 2  ;;  %v349_v42 = vmul.f32 0.1, %v341_v32 }
 0x151   :  { %v2298_v49 = vpop.eup %2297 }
 0x152   :  { %v2300_v18 = vpop.eup %2299  ;;  %v1178_v36 = vxor.u32 2147483648, %v2298_v49 }
 0x153   :  { %v1175_v30 = vxor.u32 2147483648, %v2300_v18 }
 0x154   :  { %v1179_v48 = vsel %vm1177_vm1, %v1178_v36, %v2300_v18  ;;  %v2019_v61 = vsel %vm2017_vm6, %v1178_v36, %v2300_v18 }
 0x155   :  { %v1176_v13 = vsel %vm1174_vm11, %v2298_v49, %v1175_v30  ;;  %v2016_v59 = vsel %vm2014_vm9, %v2298_v49, %v1175_v30 }
 0x156   :  { %v1180_v45 = vsel %vm1173_vm13, %v1176_v13, %v1179_v48  ;;  %v2020_v16 = vsel %vm2013_vm3, %v2016_v59, %v2019_v61 }
 0x157   :  { %v1181_v2 = vsel %vm1171_vm14, nan, %v1180_v45  ;;  %v2021_v41 = vsel %vm1171_vm14, nan, %v2020_v16 }
 0x158   :  { %v1189_v47 = vmul.f32 %v1181_v2, %v349_v42  ;;  %v2029_v46 = vmul.f32 %v2021_v41, %v349_v42 }
 0x15a   :  { %v2053_v35 = vadd.f32 1.0, %v1189_v47  ;;  %v2077_v37 = vadd.f32 1.0, %v2029_v46 }
 0x15c   :  { %v2061_v29 = vmul.f32 %v2053_v35, %v2037_v14  ;;  %v2093_v63 = vrot.slane %v2077_v37, 4 }
 0x15e   :  { %2069 = vst [vmem:[#allocation6 + $0x38] sm:$0xf] %v2061_v29  ;;  %v2109_v1 = vmul.f32 %v2093_v63, %v2045_v43 }
 0x160   :  { %2117 = vst [vmem:[#allocation6 + $0x38] sm:$0xf0] %v2109_v1 }
 0x161   :  { %2334 = shalt.err (!%p2331_p12)
}
 0x162   :  { %s2335_s4 = scalar_lea.hbm %s3487_s2, 1024 }
 0x163   :  { %p2336_p13 = scmp.ne.s32.totalorder %s3487_s2, %s2335_s4  ;;  %p2339_p0 = scmp.lt.u32.totalorder %s2335_s4, %s3487_s2 }
 0x165   :  { %p2341_p1 = pnand %p2339_p0, %p2336_p13 }
 0x167   :  { %2344 = shalt.err (!%p2341_p1)
}
 0x168   :  { %2127 = dma.vmem_to_hbm [thread:$0]  %s2125_s28, 1024, %s3487_s2, [#allocation5]  }
 0x169   :  { %2347 = dma.done.wait [#allocation5], 1024  }
 0x16a   :  { %2348 = vsyncadd [#allocation5], 4294966272 }
 0x16b   :  { %2131 = vsyncpa [#allocation4], 1 }
 0x16c   :  { %2132 = vsyncpa [#allocation5], 1 }

</bundles_post_ra>
